<compile_context>
chip_gen: v6e
topology: v6e:2x2x1
jax: 0.10.0
libtpu: 0.0.40
codegen_flags: <defaults>
</compile_context>

<pallas_src>
import jax
import jax.numpy as jnp
from jax.experimental import pallas as pl
from jax.experimental.pallas import tpu as pltpu

EPS = 1e-5


def _bn_relu(h, gamma, beta):
    """Training-mode BatchNorm1d (biased variance) + ReLU, all in f32.

    Centered activation is computed once and reused; gamma * rsqrt(var+eps)
    is folded into a single per-feature scale.
    """
    mean = jnp.mean(h, axis=0, keepdims=True)
    hc = h - mean
    var = jnp.mean(hc * hc, axis=0, keepdims=True)
    scale = gamma * jax.lax.rsqrt(var + EPS)
    return jnp.maximum(hc * scale + beta, 0.0)


def generator_kernel(
    x_ref,
    w1_ref, b1_ref, g1_ref, be1_ref,
    w2_ref, b2_ref, g2_ref, be2_ref,
    w3_ref, b3_ref, g3_ref, be3_ref,
    w4_ref, b4_ref,
    o_ref,
):
    # x arrives already in bf16; feed it straight to the MXU (f32 accumulate).
    x = x_ref[...]

    # Layer 1: Linear(D, 256) + BN + ReLU
    h = jnp.dot(x, w1_ref[...], preferred_element_type=jnp.float32) + b1_ref[...]
    h = _bn_relu(h, g1_ref[...], be1_ref[...])

    # Layer 2: Linear(256, 512) + BN + ReLU
    h = jnp.dot(h.astype(jnp.bfloat16), w2_ref[...],
                preferred_element_type=jnp.float32) + b2_ref[...]
    h = _bn_relu(h, g2_ref[...], be2_ref[...])

    # Layer 3: Linear(512, 1024) + BN + ReLU
    h = jnp.dot(h.astype(jnp.bfloat16), w3_ref[...],
                preferred_element_type=jnp.float32) + b3_ref[...]
    h = _bn_relu(h, g3_ref[...], be3_ref[...])

    # Layer 4: Linear(1024, O) + Tanh (EUP); lane-dense O -> unmasked stores.
    logits = jnp.dot(h.astype(jnp.bfloat16), w4_ref[...],
                     preferred_element_type=jnp.float32) + b4_ref[...]
    o_ref[...] = jnp.tanh(logits).astype(o_ref.dtype)


def _vmem_limit_bytes():
    """Generation-aware VMEM limit with headroom (v7x has only 64 MiB/TC)."""
    try:
        cap = pltpu.get_tpu_info().vmem_capacity_bytes
        return int(min(cap // 2, 48 << 20))
    except Exception:
        return 32 << 20


def generator_forward(x, params):
    """x: [B, D] float32.  params: flat f32 tuple (w, b, [gamma, beta]) x 4."""
    B = x.shape[0]
    out_dim = params[-2].shape[1]  # w4: [1024, out_dim]

    # bf16 for all matmul inputs (weights cast once here, x cast here too);
    # biases and BN affine params stay f32.
    x_bf16 = x.astype(jnp.bfloat16)
    casted = []
    for i, p in enumerate(params):
        is_weight = p.ndim == 2 and p.shape[0] != 1
        casted.append(p.astype(jnp.bfloat16) if is_weight else p.astype(jnp.float32))

    vmem_spec = pl.BlockSpec(memory_space=pltpu.MemorySpace.VMEM)
    n_inputs = 1 + len(casted)

    return pl.pallas_call(
        generator_kernel,
        out_shape=jax.ShapeDtypeStruct((B, out_dim), jnp.float32),
        in_specs=[vmem_spec] * n_inputs,
        out_specs=vmem_spec,
        compiler_params=pltpu.CompilerParams(vmem_limit_bytes=_vmem_limit_bytes()),
    )(x_bf16, *casted)


def init_params(key, input_dim, output_dim):
    """Deterministic synthetic init.  Weights stored [in, out] so the kernel
    computes x @ W + b (equivalent to PyTorch's x @ W.T with W [out, in])."""
    dims = [input_dim, 256, 512, 1024, output_dim]
    params = []
    for li in range(4):
        fan_in, fan_out = dims[li], dims[li + 1]
        key, kw, kb = jax.random.split(key, 3)
        bound = 1.0 / jnp.sqrt(fan_in)
        w = jax.random.uniform(kw, (fan_in, fan_out), jnp.float32, -bound, bound)
        b = jax.random.uniform(kb, (1, fan_out), jnp.float32, -bound, bound)
        params.extend([w, b])
        if li < 3:  # BatchNorm gamma / beta (no BN after the last Linear)
            params.extend([
                jnp.ones((1, fan_out), jnp.float32),   # gamma
                jnp.zeros((1, fan_out), jnp.float32),  # beta
            ])
    return tuple(params)


def reference_forward(x, params, *, bf16_matmul):
    """Pure-JAX reference.  bf16_matmul=True mirrors the kernel's precision;
    False is the full-f32 PyTorch-semantics baseline."""
    (w1, b1, g1, be1, w2, b2, g2, be2, w3, b3, g3, be3, w4, b4) = params

    def dot(a, w):
        if bf16_matmul:
            a = a.astype(jnp.bfloat16)
            w = w.astype(jnp.bfloat16)
        return jnp.dot(a, w, preferred_element_type=jnp.float32)

    def bn_relu(h, g, be):
        m = jnp.mean(h, axis=0, keepdims=True)
        v = jnp.mean((h - m) ** 2, axis=0, keepdims=True)
        return jnp.maximum((h - m) * jax.lax.rsqrt(v + EPS) * g + be, 0.0)

    h = bn_relu(dot(x, w1) + b1, g1, be1)
    h = bn_relu(dot(h, w2) + b2, g2, be2)
    h = bn_relu(dot(h, w3) + b3, g3, be3)
    return jnp.tanh(dot(h, w4) + b4)


if __name__ == "__main__":
    key = jax.random.PRNGKey(0)
    batch, input_dim, output_dim = 8, 32, 128  # lane-dense output (128)

    key, kx, kp = jax.random.split(key, 3)
    x = jax.random.normal(kx, (batch, input_dim), jnp.float32)
    params = init_params(kp, input_dim, output_dim)

    out = generator_forward(x, params)
    out = jax.block_until_ready(out)

    ref_match = reference_forward(x, params, bf16_matmul=True)   # same precision
    ref_f32 = reference_forward(x, params, bf16_matmul=False)    # full f32 spec

    assert out.shape == (batch, output_dim), out.shape
    assert jnp.allclose(out, ref_match, atol=2e-3, rtol=2e-3), (
        f"max abs diff vs bf16-matched ref: {jnp.max(jnp.abs(out - ref_match))}"
    )
    assert jnp.allclose(out, ref_f32, atol=5e-2, rtol=5e-2), (
        f"max abs diff vs f32 ref: {jnp.max(jnp.abs(out - ref_f32))}"
    )
    print("KERNEL_OK")
</pallas_src>

<mosaic_0001>
module attributes {stable_mosaic.version = 11 : i64} {
  func.func @generator_kernel(%arg0: memref<8x32xbf16, #tpu.memory_space<vmem>>, %arg1: memref<32x256xbf16, #tpu.memory_space<vmem>>, %arg2: memref<1x256xf32, #tpu.memory_space<vmem>>, %arg3: memref<1x256xf32, #tpu.memory_space<vmem>>, %arg4: memref<1x256xf32, #tpu.memory_space<vmem>>, %arg5: memref<256x512xbf16, #tpu.memory_space<vmem>>, %arg6: memref<1x512xf32, #tpu.memory_space<vmem>>, %arg7: memref<1x512xf32, #tpu.memory_space<vmem>>, %arg8: memref<1x512xf32, #tpu.memory_space<vmem>>, %arg9: memref<512x1024xbf16, #tpu.memory_space<vmem>>, %arg10: memref<1x1024xf32, #tpu.memory_space<vmem>>, %arg11: memref<1x1024xf32, #tpu.memory_space<vmem>>, %arg12: memref<1x1024xf32, #tpu.memory_space<vmem>>, %arg13: memref<1024x128xbf16, #tpu.memory_space<vmem>>, %arg14: memref<1x128xf32, #tpu.memory_space<vmem>>, %arg15: memref<8x128xf32, #tpu.memory_space<vmem>>) attributes {dimension_semantics = [], scalar_prefetch = 0 : i64, scratch_operands = 0 : i64, tpu.core_type = #tpu.core_type<tc>} {
    %c0 = arith.constant 0 : index
    %c0_0 = arith.constant 0 : index
    %0 = vector.load %arg0[%c0, %c0_0] : memref<8x32xbf16, #tpu.memory_space<vmem>>, vector<8x32xbf16>
    %c0_1 = arith.constant 0 : index
    %c0_2 = arith.constant 0 : index
    %1 = vector.load %arg1[%c0_1, %c0_2] : memref<32x256xbf16, #tpu.memory_space<vmem>>, vector<32x256xbf16>
    %cst = arith.constant dense<0.000000e+00> : vector<8x256xf32>
    %2 = tpu.matmul %0, %1, %cst {dimension_numbers = #tpu.dot_dimension_numbers<[1], [0], [0], [1], [0, 0, 1, 1], [], []>} : vector<8x32xbf16>, vector<32x256xbf16>, vector<8x256xf32> -> vector<8x256xf32>
    %c0_3 = arith.constant 0 : index
    %c0_4 = arith.constant 0 : index
    %3 = vector.load %arg2[%c0_3, %c0_4] : memref<1x256xf32, #tpu.memory_space<vmem>>, vector<1x256xf32>
    %4 = vector.broadcast %3 : vector<1x256xf32> to vector<8x256xf32>
    %5 = arith.addf %2, %4 : vector<8x256xf32>
    %c0_5 = arith.constant 0 : index
    %c0_6 = arith.constant 0 : index
    %6 = vector.load %arg3[%c0_5, %c0_6] : memref<1x256xf32, #tpu.memory_space<vmem>>, vector<1x256xf32>
    %c0_7 = arith.constant 0 : index
    %c0_8 = arith.constant 0 : index
    %7 = vector.load %arg4[%c0_7, %c0_8] : memref<1x256xf32, #tpu.memory_space<vmem>>, vector<1x256xf32>
    %cst_9 = arith.constant dense<0.000000e+00> : vector<256xf32>
    %8 = vector.multi_reduction <add>, %5, %cst_9 [0] : vector<8x256xf32> to vector<256xf32>
    %9 = vector.shape_cast %8 : vector<256xf32> to vector<1x256xf32>
    %cst_10 = arith.constant 8.000000e+00 : f32
    %10 = vector.broadcast %cst_10 : f32 to vector<1x256xf32>
    %11 = arith.divf %9, %10 : vector<1x256xf32>
    %12 = vector.broadcast %11 : vector<1x256xf32> to vector<8x256xf32>
    %13 = arith.subf %5, %12 : vector<8x256xf32>
    %14 = arith.mulf %13, %13 : vector<8x256xf32>
    %cst_11 = arith.constant dense<0.000000e+00> : vector<256xf32>
    %15 = vector.multi_reduction <add>, %14, %cst_11 [0] : vector<8x256xf32> to vector<256xf32>
    %16 = vector.shape_cast %15 : vector<256xf32> to vector<1x256xf32>
    %cst_12 = arith.constant 8.000000e+00 : f32
    %17 = vector.broadcast %cst_12 : f32 to vector<1x256xf32>
    %18 = arith.divf %16, %17 : vector<1x256xf32>
    %cst_13 = arith.constant 9.99999974E-6 : f32
    %19 = vector.broadcast %cst_13 : f32 to vector<1x256xf32>
    %20 = arith.addf %18, %19 : vector<1x256xf32>
    %21 = math.rsqrt %20 : vector<1x256xf32>
    %22 = arith.mulf %6, %21 : vector<1x256xf32>
    %23 = vector.broadcast %22 : vector<1x256xf32> to vector<8x256xf32>
    %24 = arith.mulf %13, %23 : vector<8x256xf32>
    %25 = vector.broadcast %7 : vector<1x256xf32> to vector<8x256xf32>
    %26 = arith.addf %24, %25 : vector<8x256xf32>
    %cst_14 = arith.constant 0.000000e+00 : f32
    %27 = vector.broadcast %cst_14 : f32 to vector<8x256xf32>
    %28 = arith.maximumf %26, %27 : vector<8x256xf32>
    %29 = arith.truncf %28 : vector<8x256xf32> to vector<8x256xbf16>
    %c0_15 = arith.constant 0 : index
    %c0_16 = arith.constant 0 : index
    %30 = vector.load %arg5[%c0_15, %c0_16] : memref<256x512xbf16, #tpu.memory_space<vmem>>, vector<256x512xbf16>
    %cst_17 = arith.constant dense<0.000000e+00> : vector<8x512xf32>
    %31 = tpu.matmul %29, %30, %cst_17 {dimension_numbers = #tpu.dot_dimension_numbers<[1], [0], [0], [1], [0, 0, 1, 1], [], []>} : vector<8x256xbf16>, vector<256x512xbf16>, vector<8x512xf32> -> vector<8x512xf32>
    %c0_18 = arith.constant 0 : index
    %c0_19 = arith.constant 0 : index
    %32 = vector.load %arg6[%c0_18, %c0_19] : memref<1x512xf32, #tpu.memory_space<vmem>>, vector<1x512xf32>
    %33 = vector.broadcast %32 : vector<1x512xf32> to vector<8x512xf32>
    %34 = arith.addf %31, %33 : vector<8x512xf32>
    %c0_20 = arith.constant 0 : index
    %c0_21 = arith.constant 0 : index
    %35 = vector.load %arg7[%c0_20, %c0_21] : memref<1x512xf32, #tpu.memory_space<vmem>>, vector<1x512xf32>
    %c0_22 = arith.constant 0 : index
    %c0_23 = arith.constant 0 : index
    %36 = vector.load %arg8[%c0_22, %c0_23] : memref<1x512xf32, #tpu.memory_space<vmem>>, vector<1x512xf32>
    %cst_24 = arith.constant dense<0.000000e+00> : vector<512xf32>
    %37 = vector.multi_reduction <add>, %34, %cst_24 [0] : vector<8x512xf32> to vector<512xf32>
    %38 = vector.shape_cast %37 : vector<512xf32> to vector<1x512xf32>
    %cst_25 = arith.constant 8.000000e+00 : f32
    %39 = vector.broadcast %cst_25 : f32 to vector<1x512xf32>
    %40 = arith.divf %38, %39 : vector<1x512xf32>
    %41 = vector.broadcast %40 : vector<1x512xf32> to vector<8x512xf32>
    %42 = arith.subf %34, %41 : vector<8x512xf32>
    %43 = arith.mulf %42, %42 : vector<8x512xf32>
    %cst_26 = arith.constant dense<0.000000e+00> : vector<512xf32>
    %44 = vector.multi_reduction <add>, %43, %cst_26 [0] : vector<8x512xf32> to vector<512xf32>
    %45 = vector.shape_cast %44 : vector<512xf32> to vector<1x512xf32>
    %cst_27 = arith.constant 8.000000e+00 : f32
    %46 = vector.broadcast %cst_27 : f32 to vector<1x512xf32>
    %47 = arith.divf %45, %46 : vector<1x512xf32>
    %cst_28 = arith.constant 9.99999974E-6 : f32
    %48 = vector.broadcast %cst_28 : f32 to vector<1x512xf32>
    %49 = arith.addf %47, %48 : vector<1x512xf32>
    %50 = math.rsqrt %49 : vector<1x512xf32>
    %51 = arith.mulf %35, %50 : vector<1x512xf32>
    %52 = vector.broadcast %51 : vector<1x512xf32> to vector<8x512xf32>
    %53 = arith.mulf %42, %52 : vector<8x512xf32>
    %54 = vector.broadcast %36 : vector<1x512xf32> to vector<8x512xf32>
    %55 = arith.addf %53, %54 : vector<8x512xf32>
    %cst_29 = arith.constant 0.000000e+00 : f32
    %56 = vector.broadcast %cst_29 : f32 to vector<8x512xf32>
    %57 = arith.maximumf %55, %56 : vector<8x512xf32>
    %58 = arith.truncf %57 : vector<8x512xf32> to vector<8x512xbf16>
    %c0_30 = arith.constant 0 : index
    %c0_31 = arith.constant 0 : index
    %59 = vector.load %arg9[%c0_30, %c0_31] : memref<512x1024xbf16, #tpu.memory_space<vmem>>, vector<512x1024xbf16>
    %cst_32 = arith.constant dense<0.000000e+00> : vector<8x1024xf32>
    %60 = tpu.matmul %58, %59, %cst_32 {dimension_numbers = #tpu.dot_dimension_numbers<[1], [0], [0], [1], [0, 0, 1, 1], [], []>} : vector<8x512xbf16>, vector<512x1024xbf16>, vector<8x1024xf32> -> vector<8x1024xf32>
    %c0_33 = arith.constant 0 : index
    %c0_34 = arith.constant 0 : index
    %61 = vector.load %arg10[%c0_33, %c0_34] : memref<1x1024xf32, #tpu.memory_space<vmem>>, vector<1x1024xf32>
    %62 = vector.broadcast %61 : vector<1x1024xf32> to vector<8x1024xf32>
    %63 = arith.addf %60, %62 : vector<8x1024xf32>
    %c0_35 = arith.constant 0 : index
    %c0_36 = arith.constant 0 : index
    %64 = vector.load %arg11[%c0_35, %c0_36] : memref<1x1024xf32, #tpu.memory_space<vmem>>, vector<1x1024xf32>
    %c0_37 = arith.constant 0 : index
    %c0_38 = arith.constant 0 : index
    %65 = vector.load %arg12[%c0_37, %c0_38] : memref<1x1024xf32, #tpu.memory_space<vmem>>, vector<1x1024xf32>
    %cst_39 = arith.constant dense<0.000000e+00> : vector<1024xf32>
    %66 = vector.multi_reduction <add>, %63, %cst_39 [0] : vector<8x1024xf32> to vector<1024xf32>
    %67 = vector.shape_cast %66 : vector<1024xf32> to vector<1x1024xf32>
    %cst_40 = arith.constant 8.000000e+00 : f32
    %68 = vector.broadcast %cst_40 : f32 to vector<1x1024xf32>
    %69 = arith.divf %67, %68 : vector<1x1024xf32>
    %70 = vector.broadcast %69 : vector<1x1024xf32> to vector<8x1024xf32>
    %71 = arith.subf %63, %70 : vector<8x1024xf32>
    %72 = arith.mulf %71, %71 : vector<8x1024xf32>
    %cst_41 = arith.constant dense<0.000000e+00> : vector<1024xf32>
    %73 = vector.multi_reduction <add>, %72, %cst_41 [0] : vector<8x1024xf32> to vector<1024xf32>
    %74 = vector.shape_cast %73 : vector<1024xf32> to vector<1x1024xf32>
    %cst_42 = arith.constant 8.000000e+00 : f32
    %75 = vector.broadcast %cst_42 : f32 to vector<1x1024xf32>
    %76 = arith.divf %74, %75 : vector<1x1024xf32>
    %cst_43 = arith.constant 9.99999974E-6 : f32
    %77 = vector.broadcast %cst_43 : f32 to vector<1x1024xf32>
    %78 = arith.addf %76, %77 : vector<1x1024xf32>
    %79 = math.rsqrt %78 : vector<1x1024xf32>
    %80 = arith.mulf %64, %79 : vector<1x1024xf32>
    %81 = vector.broadcast %80 : vector<1x1024xf32> to vector<8x1024xf32>
    %82 = arith.mulf %71, %81 : vector<8x1024xf32>
    %83 = vector.broadcast %65 : vector<1x1024xf32> to vector<8x1024xf32>
    %84 = arith.addf %82, %83 : vector<8x1024xf32>
    %cst_44 = arith.constant 0.000000e+00 : f32
    %85 = vector.broadcast %cst_44 : f32 to vector<8x1024xf32>
    %86 = arith.maximumf %84, %85 : vector<8x1024xf32>
    %87 = arith.truncf %86 : vector<8x1024xf32> to vector<8x1024xbf16>
    %c0_45 = arith.constant 0 : index
    %c0_46 = arith.constant 0 : index
    %88 = vector.load %arg13[%c0_45, %c0_46] : memref<1024x128xbf16, #tpu.memory_space<vmem>>, vector<1024x128xbf16>
    %cst_47 = arith.constant dense<0.000000e+00> : vector<8x128xf32>
    %89 = tpu.matmul %87, %88, %cst_47 {dimension_numbers = #tpu.dot_dimension_numbers<[1], [0], [0], [1], [0, 0, 1, 1], [], []>} : vector<8x1024xbf16>, vector<1024x128xbf16>, vector<8x128xf32> -> vector<8x128xf32>
    %c0_48 = arith.constant 0 : index
    %c0_49 = arith.constant 0 : index
    %90 = vector.load %arg14[%c0_48, %c0_49] : memref<1x128xf32, #tpu.memory_space<vmem>>, vector<1x128xf32>
    %91 = vector.broadcast %90 : vector<1x128xf32> to vector<8x128xf32>
    %92 = arith.addf %89, %91 : vector<8x128xf32>
    %93 = math.tanh %92 : vector<8x128xf32>
    %c0_50 = arith.constant 0 : index
    %c0_51 = arith.constant 0 : index
    %94 = vector.load %arg15[%c0_50, %c0_51] : memref<8x128xf32, #tpu.memory_space<vmem>>, vector<8x128xf32>
    tpu.vector_store %arg15[%c0_50, %c0_51], %93 {strides = array<i32>} : memref<8x128xf32, #tpu.memory_space<vmem>>, vector<8x128xf32>,
    return
  }
}

</mosaic_0001>

<bundles_post_ra>
// kernel: tpu_custom_call.1
= control target key start
LH: loop header
LB: loop body
LE: loop exit
PB: predicated region body
PF: predicated region fallthrough
CT: control target
= control target key end

     0   :  { %20 = vsyncpa [#allocation3], 0  ;;  %s5294_s0 = inlined_call_operand.hbm [shape: bf16[8,32], index: 0, kind: input, shape index: {}]   ;;  %s5295_s1 = inlined_call_operand.hbm [shape: bf16[32,256], index: 1, kind: input, shape index: {}]   ;;  %s5296_s2 = inlined_call_operand.hbm [shape: f32[1,256], index: 2, kind: input, shape index: {}]   ;;  %s5297_s3 = inlined_call_operand.hbm [shape: f32[1,256], index: 3, kind: input, shape index: {}]   ;;  %s5298_s4 = inlined_call_operand.hbm [shape: f32[1,256], index: 4, kind: input, shape index: {}]   ;;  %s5299_s5 = inlined_call_operand.hbm [shape: bf16[256,512], index: 5, kind: input, shape index: {}]   ;;  %s5300_s6 = inlined_call_operand.hbm [shape: f32[1,512], index: 6, kind: input, shape index: {}]   ;;  %s5301_s7 = inlined_call_operand.hbm [shape: f32[1,512], index: 7, kind: input, shape index: {}]   ;;  %s5302_s8 = inlined_call_operand.hbm [shape: f32[1,512], index: 8, kind: input, shape index: {}]   ;;  %s5303_s9 = inlined_call_operand.hbm [shape: bf16[512,1024], index: 9, kind: input, shape index: {}]   ;;  %s5304_s10 = inlined_call_operand.vmem [shape: f32[1,1024], index: 10, kind: input, shape index: {}]   ;;  %s5305_s11 = inlined_call_operand.vmem [shape: f32[1,1024], index: 11, kind: input, shape index: {}]   ;;  %s5306_s12 = inlined_call_operand.hbm [shape: f32[1,1024], index: 12, kind: input, shape index: {}]   ;;  %s5307_s13 = inlined_call_operand.hbm [shape: bf16[1024,128], index: 13, kind: input, shape index: {}]   ;;  %s5308_s14 = inlined_call_operand.vmem [shape: f32[1,128], index: 14, kind: input, shape index: {}]   ;;  %s5309_s15 = inlined_call_operand.hbm [shape: f32[8,128], index: 15, kind: output, shape index: {}]  }
   0x1   :  { %21 = vsyncpa [#allocation6], 0 }
   0x2   :  { %22 = vsyncpa [#allocation9], 0 }
   0x3   :  { %23 = vsyncpa [#allocation12], 0 }
   0x4   :  { %24 = vsyncpa [#allocation15], 0 }
   0x5   :  { %25 = vsyncpa [#allocation18], 0 }
   0x6   :  { %26 = vsyncpa [#allocation21], 0 }
   0x7   :  { %27 = vsyncpa [#allocation4], 0  ;;  %s4919_s18 = smov [#allocation5]  }
   0x8   :  { %s43_s19 = sshll.u32 %s4919_s18, 4  ;;  %s44_s19 = int_to_ptr.vmem [resolvable:$true] %s43_s19 }
   0x9   :  { %s4651_s20 = scalar_lea.vmem %s44_s19, 512  ;;  %p4656_p1 = scmp.lt.s32.totalorder %s44_s19, %s44_s19 }
   0xa   :  { %p4652_p0 = scmp.ne.s32.totalorder %s44_s19, %s4651_s20  ;;  %p4657_p2 = scmp.lt.s32.totalorder %s4651_s20, %s4651_s20 }
   0xc   :  { %p4658_p3 = por %p4657_p2, %p4656_p1 }
   0xe   :  { %p4659_p4 = pnand %p4658_p3, %p4652_p0 }
  0x10   :  { %4662 = shalt.err (!%p4659_p4)
}
  0x11   :  { %s4920_s21 = smov 128   ;;  %s4921_s22 = smov 8  }
  0x12   :  { %49 = dma.hbm_to_vmem [thread:$0]  %s5295_s1, 512, %s44_s19, [#allocation6], %s4920_s21, %s4920_s21, %s4921_s22  }
  0x13   :  { %s4922_s25 = smov [#allocation8]   ;;  %s4923_s27 = smov [#allocation11]  }
  0x14   :  { %s66_s26 = sshll.u32 %s4922_s25, 4  ;;  %s85_s28 = sshll.u32 %s4923_s27, 4  ;;  %s67_s26 = int_to_ptr.vmem [resolvable:$true] %s66_s26  ;;  %s86_s28 = int_to_ptr.vmem [resolvable:$true] %s85_s28 }
  0x15   :  { %s4671_s29 = scalar_lea.vmem %s67_s26, 32  ;;  %p4676_p6 = scmp.lt.s32.totalorder %s67_s26, %s67_s26 }
  0x16   :  { %p4672_p5 = scmp.ne.s32.totalorder %s67_s26, %s4671_s29  ;;  %p4677_p7 = scmp.lt.s32.totalorder %s4671_s29, %s4671_s29 }
  0x18   :  { %p4678_p8 = por %p4677_p7, %p4676_p6 }
  0x1a   :  { %p4679_p9 = pnand %p4678_p8, %p4672_p5 }
  0x1c   :  { %4682 = shalt.err (!%p4679_p9)
}
  0x1d   :  { %69 = dma.hbm_to_vmem [thread:$0]  %s5297_s3, 32, %s67_s26, [#allocation9]  }
  0x1e   :  { %s4691_s17 = scalar_lea.vmem %s86_s28, 8192  ;;  %p4696_p11 = scmp.lt.s32.totalorder %s86_s28, %s86_s28 }
  0x1f   :  { %p4692_p10 = scmp.ne.s32.totalorder %s86_s28, %s4691_s17  ;;  %p4697_p12 = scmp.lt.s32.totalorder %s4691_s17, %s4691_s17 }
  0x21   :  { %p4698_p13 = por %p4697_p12, %p4696_p11 }
  0x23   :  { %p4699_p0 = pnand %p4698_p13, %p4692_p10 }
  0x25   :  { %4702 = shalt.err (!%p4699_p0)
}
  0x26   :  { %s4924_s1 = smov 256   ;;  %s4925_s18 = smov 16  }
  0x27   :  { %91 = dma.hbm_to_vmem [thread:$0]  %s5299_s5, 8192, %s86_s28, [#allocation12], %s4924_s1, %s4924_s1, %s4925_s18  }
  0x28   :  { %s4926_s21 = smov [#allocation14]   ;;  %s4927_s23 = smov [#allocation17]  }
  0x29   :  { %s108_s22 = sshll.u32 %s4926_s21, 4  ;;  %s127_s24 = sshll.u32 %s4927_s23, 4  ;;  %s109_s22 = int_to_ptr.vmem [resolvable:$true] %s108_s22  ;;  %s128_s24 = int_to_ptr.vmem [resolvable:$true] %s127_s24 }
  0x2a   :  { %s4711_s3 = scalar_lea.vmem %s109_s22, 64  ;;  %p4716_p2 = scmp.lt.s32.totalorder %s109_s22, %s109_s22 }
  0x2b   :  { %p4712_p1 = scmp.ne.s32.totalorder %s109_s22, %s4711_s3  ;;  %p4717_p3 = scmp.lt.s32.totalorder %s4711_s3, %s4711_s3 }
  0x2d   :  { %p4718_p4 = por %p4717_p3, %p4716_p2 }
  0x2f   :  { %p4719_p5 = pnand %p4718_p4, %p4712_p1 }
  0x31   :  { %4722 = shalt.err (!%p4719_p5)
}
  0x32   :  { %111 = dma.hbm_to_vmem [thread:$0]  %s5301_s7, 64, %s109_s22, [#allocation15]  }
  0x33   :  { %s4731_s27 = scalar_lea.vmem %s128_s24, 32768  ;;  %p4736_p7 = scmp.lt.s32.totalorder %s128_s24, %s128_s24 }
  0x34   :  { %p4732_p6 = scmp.ne.s32.totalorder %s128_s24, %s4731_s27  ;;  %p4737_p8 = scmp.lt.s32.totalorder %s4731_s27, %s4731_s27 }
  0x36   :  { %p4738_p9 = por %p4737_p8, %p4736_p7 }
  0x38   :  { %p4739_p10 = pnand %p4738_p9, %p4732_p6 }
  0x3a   :  { %4742 = shalt.err (!%p4739_p10)
}
  0x3b   :  { %s4928_s5 = smov 512   ;;  %s4929_s28 = smov 32  }
  0x3c   :  { %133 = dma.hbm_to_vmem [thread:$0]  %s5303_s9, 32768, %s128_s24, [#allocation18], %s4928_s5, %s4928_s5, %s4929_s28  }
  0x3d   :  { %s4930_s16 = smov [#allocation2]   ;;  %s4931_s1 = smov [#allocation7]  }
  0x3e   :  { %s34_s17 = sshll.u32 %s4930_s16, 4  ;;  %s56_s18 = sshll.u32 %s4931_s1, 4  ;;  %s35_s17 = int_to_ptr.vmem [resolvable:$true] %s34_s17  ;;  %s57_s18 = int_to_ptr.vmem [resolvable:$true] %s56_s18 }
  0x3f   :  { %s4751_s7 = scalar_lea.vmem %s35_s17, 64  ;;  %p4756_p12 = scmp.lt.s32.totalorder %s35_s17, %s35_s17 }
  0x40   :  { %p4752_p11 = scmp.ne.s32.totalorder %s35_s17, %s4751_s7  ;;  %p4757_p13 = scmp.lt.s32.totalorder %s4751_s7, %s4751_s7 }
  0x42   :  { %p4758_p0 = por %p4757_p13, %p4756_p12 }
  0x44   :  { %p4759_p1 = pnand %p4758_p0, %p4752_p11 }
  0x46   :  { %4762 = shalt.err (!%p4759_p1)
}
  0x47   :  { %37 = dma.hbm_to_vmem [thread:$0]  %s5294_s0, 64, %s35_s17, [#allocation3]  }
  0x48   :  { %s4771_s21 = scalar_lea.vmem %s57_s18, 32  ;;  %p4776_p3 = scmp.lt.s32.totalorder %s57_s18, %s57_s18 }
  0x49   :  { %p4772_p2 = scmp.ne.s32.totalorder %s57_s18, %s4771_s21  ;;  %p4777_p4 = scmp.lt.s32.totalorder %s4771_s21, %s4771_s21 }
  0x4b   :  { %p4778_p5 = por %p4777_p4, %p4776_p3 }
  0x4d   :  { %p4779_p6 = pnand %p4778_p5, %p4772_p2 }
  0x4f   :  { %4782 = shalt.err (!%p4779_p6)
}
  0x50   :  { %59 = dma.hbm_to_vmem [thread:$0]  %s5296_s2, 32, %s57_s18, [#allocation6]  }
  0x51   :  { %s4932_s23 = smov [#allocation10]   ;;  %s4933_s3 = smov [#allocation13]  }
  0x52   :  { %s76_s24 = sshll.u32 %s4932_s23, 4  ;;  %s98_s25 = sshll.u32 %s4933_s3, 4  ;;  %s77_s24 = int_to_ptr.vmem [resolvable:$true] %s76_s24  ;;  %s99_s25 = int_to_ptr.vmem [resolvable:$true] %s98_s25 }
  0x53   :  { %s4791_s26 = scalar_lea.vmem %s77_s24, 32  ;;  %p4796_p8 = scmp.lt.s32.totalorder %s77_s24, %s77_s24 }
  0x54   :  { %p4792_p7 = scmp.ne.s32.totalorder %s77_s24, %s4791_s26  ;;  %p4797_p9 = scmp.lt.s32.totalorder %s4791_s26, %s4791_s26 }
  0x56   :  { %p4798_p10 = por %p4797_p9, %p4796_p8 }
  0x58   :  { %p4799_p11 = pnand %p4798_p10, %p4792_p7 }
  0x5a   :  { %4802 = shalt.err (!%p4799_p11)
}
  0x5b   :  { %79 = dma.hbm_to_vmem [thread:$0]  %s5298_s4, 32, %s77_s24, [#allocation9]  }
  0x5c   :  { %s4811_s5 = scalar_lea.vmem %s99_s25, 64  ;;  %p4816_p13 = scmp.lt.s32.totalorder %s99_s25, %s99_s25 }
  0x5d   :  { %p4812_p12 = scmp.ne.s32.totalorder %s99_s25, %s4811_s5  ;;  %p4817_p0 = scmp.lt.s32.totalorder %s4811_s5, %s4811_s5 }
  0x5f   :  { %p4818_p1 = por %p4817_p0, %p4816_p13 }
  0x61   :  { %p4819_p2 = pnand %p4818_p1, %p4812_p12 }
  0x63   :  { %4822 = shalt.err (!%p4819_p2)
}
  0x64   :  { %101 = dma.hbm_to_vmem [thread:$0]  %s5300_s6, 64, %s99_s25, [#allocation12]  }
  0x65   :  { %s4934_s29 = smov [#allocation16]   ;;  %s4935_s16 = smov [#allocation19]  }
  0x66   :  { %s118_s30 = sshll.u32 %s4934_s29, 4  ;;  %s144_s17 = sshll.u32 %s4935_s16, 4  ;;  %s119_s30 = int_to_ptr.vmem [resolvable:$true] %s118_s30  ;;  %s145_s17 = int_to_ptr.vmem [resolvable:$true] %s144_s17 }
  0x67   :  { %s4831_s1 = scalar_lea.vmem %s119_s30, 64  ;;  %p4836_p4 = scmp.lt.s32.totalorder %s119_s30, %s119_s30 }
  0x68   :  { %p4832_p3 = scmp.ne.s32.totalorder %s119_s30, %s4831_s1  ;;  %p4837_p5 = scmp.lt.s32.totalorder %s4831_s1, %s4831_s1 }
  0x6a   :  { %p4838_p6 = por %p4837_p5, %p4836_p4 }
  0x6c   :  { %p4839_p7 = pnand %p4838_p6, %p4832_p3 }
  0x6e   :  { %4842 = shalt.err (!%p4839_p7)
}
  0x6f   :  { %121 = dma.hbm_to_vmem [thread:$0]  %s5302_s8, 64, %s119_s30, [#allocation15]  }
  0x70   :  { %s4851_s7 = scalar_lea.vmem %s145_s17, 128  ;;  %p4856_p9 = scmp.lt.s32.totalorder %s145_s17, %s145_s17 }
  0x71   :  { %p4852_p8 = scmp.ne.s32.totalorder %s145_s17, %s4851_s7  ;;  %p4857_p10 = scmp.lt.s32.totalorder %s4851_s7, %s4851_s7 }
  0x73   :  { %p4858_p11 = por %p4857_p10, %p4856_p9 }
  0x75   :  { %p4859_p12 = pnand %p4858_p11, %p4852_p8 }
  0x77   :  { %4862 = shalt.err (!%p4859_p12)
}
  0x78   :  { %147 = dma.hbm_to_vmem [thread:$0]  %s5306_s12, 128, %s145_s17, [#allocation18]  }
  0x79   :  { %s4936_s20 = smov [#allocation20]  }
  0x7a   :  { %s153_s21 = sshll.u32 %s4936_s20, 4  ;;  %s154_s21 = int_to_ptr.vmem [resolvable:$true] %s153_s21 }
  0x7b   :  { %s4871_s9 = scalar_lea.vmem %s154_s21, 8192  ;;  %p4876_p0 = scmp.lt.s32.totalorder %s154_s21, %s154_s21 }
  0x7c   :  { %p4872_p13 = scmp.ne.s32.totalorder %s154_s21, %s4871_s9  ;;  %p4877_p1 = scmp.lt.s32.totalorder %s4871_s9, %s4871_s9 }
  0x7e   :  { %p4878_p2 = por %p4877_p1, %p4876_p0 }
  0x80   :  { %p4879_p3 = pnand %p4878_p2, %p4872_p13 }
  0x82   :  { %4882 = shalt.err (!%p4879_p3)
}
  0x83   :  { %s4937_s8 = smov 64   ;;  %s4938_s22 = smov 4  }
  0x84   :  { %159 = dma.hbm_to_vmem [thread:$0]  %s5307_s13, 8192, %s154_s21, [#allocation21], %s4937_s8, %s4937_s8, %s4938_s22  }
  0x85   :  { %4903 = dma.done.wait [#allocation3], 64  }
  0x86   :  { %4904 = vsyncadd [#allocation3], 4294967232 }
  0x87   :  { %4905 = dma.done.wait [#allocation6], 544  }
  0x88   :  { %4906 = vsyncadd [#allocation6], 4294966752 }
  0x89   :  { %4907 = dma.done.wait [#allocation9], 64  }
  0x8a   :  { %4908 = vsyncadd [#allocation9], 4294967232 }
  0x8b   :  { %4909 = dma.done.wait [#allocation12], 8256  }
  0x8c   :  { %4910 = vsyncadd [#allocation12], 4294959040 }
  0x8d   :  { %4911 = dma.done.wait [#allocation15], 128  }
  0x8e   :  { %4912 = vsyncadd [#allocation15], 4294967168 }
  0x8f   :  { %4913 = dma.done.wait [#allocation18], 32896  }
  0x90   :  { %4914 = vsyncadd [#allocation18], 4294934400 }
  0x91   :  { %4915 = dma.done.wait [#allocation21], 8192  }
  0x92   :  { %4916 = vsyncadd [#allocation21], 4294959104  ;;  %v4939_v0 = vmov 0   ;;  %v4447_v1 = vld [vmem:[#allocation5 + $0x14] ss:$8 sps:$4 sm:$0xff]   ;;  %vm236_vm0 = vcmask 261120  }
  0x93   :  { %272 = vmatprep.mubr.bf16.mxu0 %v4939_v0  ;;  %v4449_v2 = vld [vmem:[#allocation5 + $0x10] ss:$8 sps:$4 sm:$0xff]   ;;  %252 = vmatprep.subr.bf16.mxu0 %v4447_v1  ;;  %v4450_v3 = vld [vmem:[#allocation5 + $0x4] ss:$8 sps:$4 sm:$0xff]   ;;  %v4452_v4 = vld [vmem:[#allocation5] ss:$8 sps:$4 sm:$0xff]  }
  0x94   :  { %253 = vmatpush1.bf16.msra.mxu0 %v4449_v2  ;;  %v199_v5 = vld [vmem:[#allocation2] sm:$0xf]  ;;  %v4457_v7 = vld [vmem:[#allocation11 + $0xec] ss:$16 sps:$4 sm:$0xff]   ;;  %v4458_v9 = vld [vmem:[#allocation11 + $0xe0] ss:$16 sps:$4 sm:$0xff]  }
  0x95   :  { %254 = vmatprep.subr.bf16.mxu0 %v4450_v3  ;;  %v4453_v6 = vld [vmem:[#allocation11 + $0xe4] ss:$16 sps:$4 sm:$0xff]   ;;  %v4455_v8 = vld [vmem:[#allocation11 + $0xe8] ss:$16 sps:$4 sm:$0xff]   ;;  %v4463_v11 = vld [vmem:[#allocation11 + $0xcc] ss:$16 sps:$4 sm:$0xff]  }
  0x96   :  { %775 = vmatprep.subr.bf16.mxu1 %v4453_v6  ;;  %v4459_v10 = vld [vmem:[#allocation11 + $0xc4] ss:$16 sps:$4 sm:$0xff]   ;;  %v4461_v12 = vld [vmem:[#allocation11 + $0xc8] ss:$16 sps:$4 sm:$0xff]   ;;  %v4464_v13 = vld [vmem:[#allocation11 + $0xc0] ss:$16 sps:$4 sm:$0xff]   ;;  %v206_v6 = vlaneseq }
  0x97   :  { %776 = vmatpush1.bf16.msra.mxu1 %v4458_v9  ;;  %v4465_v14 = vld [vmem:[#allocation11 + $0xa4] ss:$16 sps:$4 sm:$0xff]   ;;  %v4469_v15 = vld [vmem:[#allocation11 + $0xac] ss:$16 sps:$4 sm:$0xff]   ;;  %v4467_v16 = vld [vmem:[#allocation11 + $0xa8] ss:$16 sps:$4 sm:$0xff]  }
  0x98   :  { %255 = vmatpush1.bf16.msra.mxu0 %v4452_v4  ;;  %777 = vmatprep.subr.bf16.mxu1 %v4459_v10  ;;  %v4470_v17 = vld [vmem:[#allocation11 + $0xa0] ss:$16 sps:$4 sm:$0xff]   ;;  %v4471_v18 = vld [vmem:[#allocation11 + $0x84] ss:$16 sps:$4 sm:$0xff]   ;;  %v4475_v19 = vld [vmem:[#allocation11 + $0x8c] ss:$16 sps:$4 sm:$0xff]  }
  0x99   :  { %816 = vmatprep.subr.bf16.mxu0 %v4457_v7  ;;  %v4473_v20 = vld [vmem:[#allocation11 + $0x88] ss:$16 sps:$4 sm:$0xff]   ;;  %v4476_v21 = vld [vmem:[#allocation11 + $0x80] ss:$16 sps:$4 sm:$0xff]   ;;  %v4477_v22 = vld [vmem:[#allocation11 + $0x64] ss:$16 sps:$4 sm:$0xff]  }
  0x9a   :  { %v4481_v23 = vld [vmem:[#allocation11 + $0x6c] ss:$16 sps:$4 sm:$0xff]   ;;  %v4479_v24 = vld [vmem:[#allocation11 + $0x68] ss:$16 sps:$4 sm:$0xff]   ;;  %v4482_v25 = vld [vmem:[#allocation11 + $0x60] ss:$16 sps:$4 sm:$0xff]  }
  0x9b   :  { %3950 = vmatmul.mubr.msk.bf16.vlgmr.msra.gmra.mxu0 %vm236_vm0, %v199_v5  ;;  %778 = vmatpush1.bf16.msra.mxu1 %v4464_v13  ;;  %v4483_v26 = vld [vmem:[#allocation11 + $0x44] ss:$16 sps:$4 sm:$0xff]   ;;  %v4487_v27 = vld [vmem:[#allocation11 + $0x4c] ss:$16 sps:$4 sm:$0xff]   ;;  %v4485_v28 = vld [vmem:[#allocation11 + $0x48] ss:$16 sps:$4 sm:$0xff]  }
  0x9c   :  { %817 = vmatpush1.bf16.msra.mxu0 %v4455_v8  ;;  %779 = vmatprep.subr.bf16.mxu1 %v4465_v14  ;;  %v4488_v29 = vld [vmem:[#allocation11 + $0x40] ss:$16 sps:$4 sm:$0xff]   ;;  %v4489_v30 = vld [vmem:[#allocation11 + $0x24] ss:$16 sps:$4 sm:$0xff]   ;;  %v4493_v31 = vld [vmem:[#allocation11 + $0x2c] ss:$16 sps:$4 sm:$0xff]  }
  0x9d   :  { %818 = vmatprep.subr.bf16.mxu0 %v4463_v11  ;;  %v4491_v32 = vld [vmem:[#allocation11 + $0x28] ss:$16 sps:$4 sm:$0xff]   ;;  %v4494_v33 = vld [vmem:[#allocation11 + $0x20] ss:$16 sps:$4 sm:$0xff]   ;;  %v4495_v34 = vld [vmem:[#allocation11 + $0x4] ss:$16 sps:$4 sm:$0xff]  }
  0x9e   :  { %v4499_v35 = vld [vmem:[#allocation11 + $0xc] ss:$16 sps:$4 sm:$0xff]   ;;  %v4497_v36 = vld [vmem:[#allocation11 + $0x8] ss:$16 sps:$4 sm:$0xff]   ;;  %v4500_v37 = vld [vmem:[#allocation11] ss:$16 sps:$4 sm:$0xff]  }
  0x9f   :  { %780 = vmatpush1.bf16.msra.mxu1 %v4470_v17  ;;  %v4501_v38 = vld [vmem:[#allocation11 + $0x1e4] ss:$16 sps:$4 sm:$0xff]   ;;  %v4505_v39 = vld [vmem:[#allocation11 + $0x1ec] ss:$16 sps:$4 sm:$0xff]   ;;  %v4503_v40 = vld [vmem:[#allocation11 + $0x1e8] ss:$16 sps:$4 sm:$0xff]  }
  0xa0   :  { %819 = vmatpush1.bf16.msra.mxu0 %v4461_v12  ;;  %781 = vmatprep.subr.bf16.mxu1 %v4471_v18  ;;  %v4506_v41 = vld [vmem:[#allocation11 + $0x1e0] ss:$16 sps:$4 sm:$0xff]   ;;  %v4507_v42 = vld [vmem:[#allocation11 + $0x1c4] ss:$16 sps:$4 sm:$0xff]   ;;  %v4511_v43 = vld [vmem:[#allocation11 + $0x1cc] ss:$16 sps:$4 sm:$0xff]  }
  0xa1   :  { %820 = vmatprep.subr.bf16.mxu0 %v4469_v15  ;;  %v4509_v44 = vld [vmem:[#allocation11 + $0x1c8] ss:$16 sps:$4 sm:$0xff]   ;;  %v4512_v45 = vld [vmem:[#allocation11 + $0x1c0] ss:$16 sps:$4 sm:$0xff]   ;;  %v4513_v46 = vld [vmem:[#allocation11 + $0x1a4] ss:$16 sps:$4 sm:$0xff]  }
  0xa2   :  { %v4517_v47 = vld [vmem:[#allocation11 + $0x1ac] ss:$16 sps:$4 sm:$0xff]   ;;  %v4515_v48 = vld [vmem:[#allocation11 + $0x1a8] ss:$16 sps:$4 sm:$0xff]   ;;  %v4518_v49 = vld [vmem:[#allocation11 + $0x1a0] ss:$16 sps:$4 sm:$0xff]  }
  0xa3   :  { %782 = vmatpush1.bf16.msra.mxu1 %v4476_v21  ;;  %v4519_v50 = vld [vmem:[#allocation11 + $0x184] ss:$16 sps:$4 sm:$0xff]   ;;  %v4523_v51 = vld [vmem:[#allocation11 + $0x18c] ss:$16 sps:$4 sm:$0xff]   ;;  %v4521_v52 = vld [vmem:[#allocation11 + $0x188] ss:$16 sps:$4 sm:$0xff]  }
  0xa4   :  { %821 = vmatpush1.bf16.msra.mxu0 %v4467_v16  ;;  %783 = vmatprep.subr.bf16.mxu1 %v4477_v22  ;;  %v4524_v53 = vld [vmem:[#allocation11 + $0x180] ss:$16 sps:$4 sm:$0xff]   ;;  %v4525_v54 = vld [vmem:[#allocation11 + $0x164] ss:$16 sps:$4 sm:$0xff]   ;;  %v4529_v55 = vld [vmem:[#allocation11 + $0x16c] ss:$16 sps:$4 sm:$0xff]  }
  0xa5   :  { %822 = vmatprep.subr.bf16.mxu0 %v4475_v19  ;;  %v4527_v56 = vld [vmem:[#allocation11 + $0x168] ss:$16 sps:$4 sm:$0xff]   ;;  %v4530_v57 = vld [vmem:[#allocation11 + $0x160] ss:$16 sps:$4 sm:$0xff]   ;;  %v4531_v58 = vld [vmem:[#allocation11 + $0x144] ss:$16 sps:$4 sm:$0xff]  }
  0xa6   :  { %v4535_v59 = vld [vmem:[#allocation11 + $0x14c] ss:$16 sps:$4 sm:$0xff]   ;;  %v4533_v60 = vld [vmem:[#allocation11 + $0x148] ss:$16 sps:$4 sm:$0xff]   ;;  %v4536_v61 = vld [vmem:[#allocation11 + $0x140] ss:$16 sps:$4 sm:$0xff]  }
  0xa7   :  { %784 = vmatpush1.bf16.msra.mxu1 %v4482_v25  ;;  %v4537_v62 = vld [vmem:[#allocation11 + $0x124] ss:$16 sps:$4 sm:$0xff]   ;;  %v4541_v63 = vld [vmem:[#allocation11 + $0x12c] ss:$16 sps:$4 sm:$0xff]   ;;  %v4539_v0 = vld [vmem:[#allocation11 + $0x128] ss:$16 sps:$4 sm:$0xff]  }
  0xa8   :  { %823 = vmatpush1.bf16.msra.mxu0 %v4473_v20  ;;  %785 = vmatprep.subr.bf16.mxu1 %v4483_v26  ;;  %v4542_v1 = vld [vmem:[#allocation11 + $0x120] ss:$16 sps:$4 sm:$0xff]   ;;  %v4543_v2 = vld [vmem:[#allocation11 + $0x104] ss:$16 sps:$4 sm:$0xff]   ;;  %v4547_v3 = vld [vmem:[#allocation11 + $0x10c] ss:$16 sps:$4 sm:$0xff]  }
  0xa9   :  { %824 = vmatprep.subr.bf16.mxu0 %v4481_v23  ;;  %v4545_v4 = vld [vmem:[#allocation11 + $0x108] ss:$16 sps:$4 sm:$0xff]   ;;  %v4548_v5 = vld [vmem:[#allocation11 + $0x100] ss:$16 sps:$4 sm:$0xff]   ;;  %v5058_v7 = vshrl.u32 %v206_v6, 7  ;;  %s4941_s26 = smov [#allocation22]  }
  0xaa   :  { %v204_v9 = vld [vmem:[#allocation7] sm:$0x3]  ;;  %s3931_s0 = sshll.u32 %s4941_s26, 4  ;;  %s3932_s0 = int_to_ptr.vmem [resolvable:$true] %s3931_s0 }
  0xab   :  { %786 = vmatpush1.bf16.msra.mxu1 %v4488_v29  ;;  %v5061_v8 = vsub.s32 0, %v5058_v7  ;;  %v5064_v10 = vsub.s32 1, %v5058_v7  ;;  %p4888_p5 = scmp.lt.s32.totalorder %s3932_s0, %s3932_s0 }
  0xac   :  { %825 = vmatpush1.bf16.msra.mxu0 %v4479_v24  ;;  %787 = vmatprep.subr.bf16.mxu1 %v4489_v30 }
  0xad   :  { %826 = vmatprep.subr.bf16.mxu0 %v4487_v27  ;;  %v209_v11 = vrot.slane %v204_v9, %v5061_v8  ;;  %v213_v12 = vrot.slane %v204_v9, %v5064_v10 }
  0xaf   :  { %788 = vmatpush1.bf16.msra.mxu1 %v4494_v33 }
  0xb0   :  { %827 = vmatpush1.bf16.msra.mxu0 %v4485_v28  ;;  %789 = vmatprep.subr.bf16.mxu1 %v4495_v34 }
  0xb1   :  { %828 = vmatprep.subr.bf16.mxu0 %v4493_v31 }
  0xb3   :  { %790 = vmatpush1.bf16.msra.mxu1 %v4500_v37 }
  0xb4   :  { %829 = vmatpush1.bf16.msra.mxu0 %v4491_v32  ;;  %791 = vmatprep.subr.bf16.mxu1 %v4501_v38 }
  0xb5   :  { %830 = vmatprep.subr.bf16.mxu0 %v4499_v35 }
  0xb7   :  { %792 = vmatpush2.bf16.msra.mxu1 %v4506_v41 }
  0xb8   :  { %831 = vmatpush1.bf16.msra.mxu0 %v4497_v36  ;;  %793 = vmatprep.subr.bf16.mxu1 %v4507_v42 }
  0xb9   :  { %832 = vmatprep.subr.bf16.mxu0 %v4505_v39 }
  0xbb   :  { %794 = vmatpush2.bf16.msra.mxu1 %v4512_v45 }
  0xbc   :  { %833 = vmatpush2.bf16.msra.mxu0 %v4503_v40  ;;  %795 = vmatprep.subr.bf16.mxu1 %v4513_v46 }
  0xbd   :  { %834 = vmatprep.subr.bf16.mxu0 %v4511_v43 }
  0xbf   :  { %796 = vmatpush2.bf16.msra.mxu1 %v4518_v49 }
  0xc0   :  { %835 = vmatpush2.bf16.msra.mxu0 %v4509_v44  ;;  %797 = vmatprep.subr.bf16.mxu1 %v4519_v50 }
  0xc1   :  { %836 = vmatprep.subr.bf16.mxu0 %v4517_v47 }
  0xc3   :  { %798 = vmatpush2.bf16.msra.mxu1 %v4524_v53  ;;  %v4940_v53 = vmov 1966171168  }
  0xc4   :  { %837 = vmatpush2.bf16.msra.mxu0 %v4515_v48  ;;  %799 = vmatprep.subr.bf16.mxu1 %v4525_v54  ;;  %v324_v54 = vunpack.c.l.s4 %v4940_v53 }
  0xc5   :  { %838 = vmatprep.subr.bf16.mxu0 %v4523_v51 }
  0xc7   :  { %800 = vmatpush2.bf16.msra.mxu1 %v4530_v57 }
  0xc8   :  { %839 = vmatpush2.bf16.msra.mxu0 %v4521_v52  ;;  %801 = vmatprep.subr.bf16.mxu1 %v4531_v58 }
  0xc9   :  { %840 = vmatprep.subr.bf16.mxu0 %v4529_v55  ;;  %v325_v55 = vunpack.c.0.s8 %v324_v54 }
  0xcb   :  { %802 = vmatpush2.bf16.msra.mxu1 %v4536_v61  ;;  %v5069_v57 = vsub.s32 %v325_v55, %v5058_v7  ;;  %v281_v61 = vld [vmem:[#allocation8] sm:$0x3] }
  0xcc   :  { %841 = vmatpush2.bf16.msra.mxu0 %v4527_v56  ;;  %803 = vmatprep.subr.bf16.mxu1 %v4537_v62 }
  0xcd   :  { %842 = vmatprep.subr.bf16.mxu0 %v4535_v59 }
  0xcf   :  { %804 = vmatpush2.bf16.msra.mxu1 %v4542_v1 }
  0xd0   :  { %843 = vmatpush2.bf16.msra.mxu0 %v4533_v60  ;;  %805 = vmatprep.subr.bf16.mxu1 %v4543_v2 }
  0xd1   :  { %844 = vmatprep.subr.bf16.mxu0 %v4541_v63  ;;  %v282_v63 = vld [vmem:[#allocation10] sm:$0x3] }
  0xd2   :  { %v356_v2 = vrot.slane %v282_v63, %v5061_v8 }
  0xd3   :  { %806 = vmatpush2.bf16.msra.mxu1 %v4548_v5 }
  0xd4   :  { %845 = vmatpush2.bf16.msra.mxu0 %v4539_v0 }
  0xd5   :  { %846 = vmatprep.subr.bf16.mxu0 %v4547_v3  ;;  %v360_v3 = vrot.slane %v282_v63, %v5064_v10 }
  0xd8   :  { %847 = vmatpush2.bf16.msra.mxu0 %v4545_v4 }
 0x15b   :  { %v274_v13 = vpop.f32.mrf.mxu0 }
 0x15c   :  { %v275_v14 = vadd.f32 %v274_v13, %v209_v11 }
 0x15d   :  { %v276_v15 = vpop.f32.mrf.mxu0 }
 0x15e   :  { %v283_v16 = vrot.slane %v275_v14, 4  ;;  %v277_v17 = vadd.f32 %v276_v15, %v213_v12 }
 0x15f   :  { %v278_v18 = vpop.f32.mrf.mxu0 }
 0x160   :  { %v284_v19 = vadd.f32 %v283_v16, %v275_v14  ;;  %v289_v20 = vrot.slane %v277_v17, 4  ;;  %v1075_v16 = vld [vmem:[#allocation17 + $0x1c0] sm:$0xff] }
 0x161   :  { %v279_v21 = vpop.f32.mrf.mxu0  ;;  %v1203_v18 = vld [vmem:[#allocation17 + $0x5c0] sm:$0xff] }
 0x162   :  { %v285_v22 = vrot.slane %v284_v19, 2  ;;  %v290_v23 = vadd.f32 %v289_v20, %v277_v17  ;;  %v1207_v20 = vld [vmem:[#allocation17 + $0x5e0] sm:$0xff] }
 0x164   :  { %v286_v24 = vadd.f32 %v285_v22, %v284_v19  ;;  %v291_v25 = vrot.slane %v290_v23, 2  ;;  %v4199_v22 = vcombine.low %v1203_v18, %v1207_v20 }
 0x166   :  { %v287_v26 = vrot.slane %v286_v24, 1  ;;  %v292_v27 = vadd.f32 %v291_v25, %v290_v23  ;;  %v4200_v23 = vcombine.high %v1203_v18, %v1207_v20  ;;  %v1071_v25 = vld [vmem:[#allocation17 + $0x1a0] sm:$0xff] }
 0x167   :  { %v1139_v20 = vld [vmem:[#allocation17 + $0x3c0] sm:$0xff] }
 0x168   :  { %v288_v28 = vadd.f32 %v287_v26, %v286_v24  ;;  %v293_v29 = vrot.slane %v292_v27, 1  ;;  %2638 = vmatprep.subr.bf16.mxu0 %v4200_v23  ;;  %v1067_v24 = vld [vmem:[#allocation17 + $0x180] sm:$0xff] }
 0x169   :  { %v1195_v26 = vld [vmem:[#allocation17 + $0x580] sm:$0xff] }
 0x16a   :  { %v296_v30 = vmul.f32 0.125, %v288_v28  ;;  %v294_v31 = vadd.f32 %v293_v29, %v292_v27  ;;  %v4064_v27 = vcombine.high %v1067_v24, %v1071_v25  ;;  %v1199_v28 = vld [vmem:[#allocation17 + $0x5a0] sm:$0xff]  ;;  %v4063_v29 = vcombine.low %v1067_v24, %v1071_v25 }
 0x16b   :  { %v1267_v23 = vld [vmem:[#allocation17 + $0x7c0] sm:$0xff] }
 0x16c   :  { %v298_v32 = vsub.f32 %v275_v14, %v296_v30  ;;  %v297_v33 = vmul.f32 0.125, %v294_v31  ;;  %v4191_v30 = vcombine.low %v1195_v26, %v1199_v28  ;;  %v4192_v31 = vcombine.high %v1195_v26, %v1199_v28  ;;  %v1271_v24 = vld [vmem:[#allocation17 + $0x7e0] sm:$0xff] }
 0x16d   :  { %v4263_v26 = vcombine.low %v1267_v23, %v1271_v24  ;;  %v1131_v28 = vld [vmem:[#allocation17 + $0x380] sm:$0xff] }
 0x16e   :  { %v300_v34 = vmul.f32 %v298_v32, %v298_v32  ;;  %v299_v35 = vsub.f32 %v277_v17, %v297_v33  ;;  %v1079_v17 = vld [vmem:[#allocation17 + $0x1e0] sm:$0xff] }
 0x16f   :  { %v4072_v19 = vcombine.high %v1075_v16, %v1079_v17  ;;  %v4071_v21 = vcombine.low %v1075_v16, %v1079_v17  ;;  %v1063_v33 = vld [vmem:[#allocation17 + $0x160] sm:$0xff] }
 0x170   :  { %v302_v36 = vrot.slane %v300_v34, 4  ;;  %v301_v37 = vmul.f32 %v299_v35, %v299_v35  ;;  %v1151_v16 = vld [vmem:[#allocation17 + $0x420] sm:$0xff] }
 0x171   :  { %2597 = vmatprep.subr.bf16.mxu1 %v4072_v19 }
 0x172   :  { %v303_v38 = vadd.f32 %v302_v36, %v300_v34  ;;  %v308_v39 = vrot.slane %v301_v37, 4  ;;  %v1187_v34 = vld [vmem:[#allocation17 + $0x540] sm:$0xff] }
 0x173   :  { %v1191_v36 = vld [vmem:[#allocation17 + $0x560] sm:$0xff] }
 0x174   :  { %v304_v40 = vrot.slane %v303_v38, 2  ;;  %v309_v41 = vadd.f32 %v308_v39, %v301_v37  ;;  %v4184_v39 = vcombine.high %v1187_v34, %v1191_v36 }
 0x176   :  { %v305_v42 = vadd.f32 %v304_v40, %v303_v38  ;;  %v310_v43 = vrot.slane %v309_v41, 2  ;;  %v4183_v38 = vcombine.low %v1187_v34, %v1191_v36  ;;  %v1051_v40 = vld [vmem:[#allocation17 + $0x100] sm:$0xff] }
 0x177   :  { %v1123_v36 = vld [vmem:[#allocation17 + $0x340] sm:$0xff] }
 0x178   :  { %v306_v44 = vrot.slane %v305_v42, 1  ;;  %v311_v45 = vadd.f32 %v310_v43, %v309_v41  ;;  %v1055_v41 = vld [vmem:[#allocation17 + $0x120] sm:$0xff] }
 0x179   :  { %v4048_v43 = vcombine.high %v1051_v40, %v1055_v41 }
 0x17a   :  { %v307_v46 = vadd.f32 %v306_v44, %v305_v42  ;;  %v312_v47 = vrot.slane %v311_v45, 1  ;;  %v1179_v42 = vld [vmem:[#allocation17 + $0x500] sm:$0xff] }
 0x17b   :  { %v1183_v44 = vld [vmem:[#allocation17 + $0x520] sm:$0xff] }
 0x17c   :  { %v314_v48 = vmul.f32 0.125, %v307_v46  ;;  %v313_v49 = vadd.f32 %v312_v47, %v311_v45  ;;  %v4047_v45 = vcombine.low %v1051_v40, %v1055_v41  ;;  %v4175_v46 = vcombine.low %v1179_v42, %v1183_v44  ;;  %v1255_v40 = vld [vmem:[#allocation17 + $0x760] sm:$0xff] }
 0x17d   :  { %v4176_v47 = vcombine.high %v1179_v42, %v1183_v44  ;;  %v1115_v44 = vld [vmem:[#allocation17 + $0x300] sm:$0xff] }
 0x17e   :  { %v316_v50 = vadd.f32 1e-05, %v314_v48  ;;  %v315_v51 = vmul.f32 0.125, %v313_v49  ;;  %v1043_v48 = vld [vmem:[#allocation17 + $0xc0] sm:$0xff] }
 0x17f   :  { %v1047_v49 = vld [vmem:[#allocation17 + $0xe0] sm:$0xff] }
 0x180   :  { %v317_v52 = vadd.f32 1e-05, %v315_v51  ;;  %4613 = vrsqrt.f32 %v316_v50  ;;  %v1171_v50 = vld [vmem:[#allocation17 + $0x4c0] sm:$0xff]  ;;  %v4040_v51 = vcombine.high %v1043_v48, %v1047_v49  ;;  %v4039_v53 = vcombine.low %v1043_v48, %v1047_v49 }
 0x181   :  { %v1247_v48 = vld [vmem:[#allocation17 + $0x720] sm:$0xff] }
 0x182   :  { %4615 = vrsqrt.f32 %v317_v52  ;;  %v1175_v52 = vld [vmem:[#allocation17 + $0x4e0] sm:$0xff] }
 0x183   :  { %v4167_v54 = vcombine.low %v1171_v50, %v1175_v52  ;;  %v4168_v55 = vcombine.high %v1171_v50, %v1175_v52  ;;  %v1107_v52 = vld [vmem:[#allocation17 + $0x2c0] sm:$0xff] }
 0x18d   :  { %v4614_v56 = vpop.eup %4613 }
 0x18f   :  { %v4616_v58 = vpop.eup %4615 }
 0x190   :  { %v322_v59 = vcombine.low %v4614_v56, %v4616_v58  ;;  %v1035_v56 = vld [vmem:[#allocation17 + $0x80] sm:$0xff] }
 0x191   :  { %v1039_v58 = vld [vmem:[#allocation17 + $0xa0] sm:$0xff] }
 0x192   :  { %v329_v60 = vrot.slane %v322_v59, %v5069_v57  ;;  %v1163_v59 = vld [vmem:[#allocation17 + $0x480] sm:$0xff] }
 0x194   :  { %v336_v62 = vrot.slane %v329_v60, %v5069_v57  ;;  %v4032_v60 = vcombine.high %v1035_v56, %v1039_v58 }
 0x196   :  { %v338_v0 = vmul.f32 %v336_v62, %v281_v61  ;;  %v1167_v61 = vld [vmem:[#allocation17 + $0x4a0] sm:$0xff]  ;;  %v4031_v62 = vcombine.low %v1035_v56, %v1039_v58 }
 0x197   :  { %v4159_v63 = vcombine.low %v1163_v59, %v1167_v61  ;;  %v1239_v56 = vld [vmem:[#allocation17 + $0x6e0] sm:$0xff] }
 0x198   :  { %v347_v1 = vrot.slane %v338_v0, %v5064_v10  ;;  %v343_v4 = vrot.slane %v338_v0, %v5061_v8  ;;  %v4160_v0 = vcombine.high %v1163_v59, %v1167_v61  ;;  %v1099_v61 = vld [vmem:[#allocation17 + $0x280] sm:$0xff] }
 0x19a   :  { %v351_v5 = vmul.f32 %v347_v1, %v299_v35  ;;  %v350_v6 = vmul.f32 %v343_v4, %v298_v32  ;;  %v1059_v32 = vld [vmem:[#allocation17 + $0x140] sm:$0xff] }
 0x19b   :  { %v4056_v35 = vcombine.high %v1059_v32, %v1063_v33  ;;  %v4055_v37 = vcombine.low %v1059_v32, %v1063_v33  ;;  %v1027_v1 = vld [vmem:[#allocation17 + $0x40] sm:$0xff] }
 0x19c   :  { %v364_v9 = vadd.f32 %v360_v3, %v351_v5  ;;  %v363_v11 = vadd.f32 %v356_v2, %v350_v6  ;;  %v1031_v2 = vld [vmem:[#allocation17 + $0x60] sm:$0xff] }
 0x19d   :  { %v1155_v3 = vld [vmem:[#allocation17 + $0x440] sm:$0xff]  ;;  %v4024_v4 = vcombine.high %v1027_v1, %v1031_v2  ;;  %v4023_v6 = vcombine.low %v1027_v1, %v1031_v2 }
 0x19e   :  { %v366_v12 = vmax.f32 %v364_v9, 0.0  ;;  %v365_v13 = vmax.f32 %v363_v11, 0.0  ;;  %v1159_v5 = vld [vmem:[#allocation17 + $0x460] sm:$0xff] }
 0x19f   :  { %v4151_v9 = vcombine.low %v1155_v3, %v1159_v5  ;;  %v4152_v11 = vcombine.high %v1155_v3, %v1159_v5  ;;  %v1263_v32 = vld [vmem:[#allocation17 + $0x7a0] sm:$0xff] }
 0x1a0   :  { %v368_v14 = vpack.c.bf16 %v366_v12, %v366_v12  ;;  %v367_v15 = vpack.c.bf16 %v365_v13, %v365_v13  ;;  %v1019_v12 = vld [vmem:[#allocation17] sm:$0xff] }
 0x1a1   :  { %v1023_v13 = vld [vmem:[#allocation17 + $0x20] sm:$0xff] }
 0x1a2   :  { %807 = vmatprep.mubr.bf16.mxu1 %v368_v14  ;;  %848 = vmatprep.mubr.bf16.mxu0 %v368_v14  ;;  %v1147_v14 = vld [vmem:[#allocation17 + $0x400] sm:$0xff]  ;;  %v4015_v17 = vcombine.low %v1019_v12, %v1023_v13 }
 0x1a3   :  { %808 = vmatmul.mubr.bf16.vlgmr.msra.gmra.mxu1 %v367_v15  ;;  %849 = vmatmul.mubr.bf16.vlgmr.msra.gmra.mxu0 %v367_v15  ;;  %v4016_v15 = vcombine.high %v1019_v12, %v1023_v13  ;;  %v4143_v18 = vcombine.low %v1147_v14, %v1151_v16  ;;  %v4144_v19 = vcombine.high %v1147_v14, %v1151_v16  ;;  %v1231_v1 = vld [vmem:[#allocation17 + $0x6a0] sm:$0xff] }
 0x1a4   :  { %2598 = vmatpush1.bf16.msra.mxu1 %v4071_v21  ;;  %2639 = vmatpush1.bf16.msra.mxu0 %v4199_v22  ;;  %v1143_v21 = vld [vmem:[#allocation17 + $0x3e0] sm:$0xff] }
 0x1a5   :  { %2599 = vmatprep.subr.bf16.mxu1 %v4064_v27  ;;  %2640 = vmatprep.subr.bf16.mxu0 %v4192_v31  ;;  %v4136_v22 = vcombine.high %v1139_v20, %v1143_v21  ;;  %v4135_v25 = vcombine.low %v1139_v20, %v1143_v21  ;;  %v4264_v27 = vcombine.high %v1267_v23, %v1271_v24  ;;  %v1091_v5 = vld [vmem:[#allocation17 + $0x240] sm:$0xff]  ;;  %v5077_v24 = vld [vmem:[#allocation17 + $0x1c8] sm:$0xff] }
 0x1a6   :  { %v1223_v12 = vld [vmem:[#allocation17 + $0x660] sm:$0xff] }
 0x1a7   :  { %v1083_v16 = vld [vmem:[#allocation17 + $0x200] sm:$0xff] }
 0x1a8   :  { %2600 = vmatpush1.bf16.msra.mxu1 %v4063_v29  ;;  %2641 = vmatpush1.bf16.msra.mxu0 %v4191_v30  ;;  %v1135_v29 = vld [vmem:[#allocation17 + $0x3a0] sm:$0xff] }
 0x1a9   :  { %2601 = vmatprep.subr.bf16.mxu1 %v4056_v35  ;;  %2642 = vmatprep.subr.bf16.mxu0 %v4184_v39  ;;  %v1259_v30 = vld [vmem:[#allocation17 + $0x780] sm:$0xff]  ;;  %v4128_v31 = vcombine.high %v1131_v28, %v1135_v29  ;;  %v4127_v33 = vcombine.low %v1131_v28, %v1135_v29  ;;  %v5085_v28 = vld [vmem:[#allocation17 + $0x5e8] sm:$0xff] }
 0x1aa   :  { %v4255_v34 = vcombine.low %v1259_v30, %v1263_v32  ;;  %v4256_v35 = vcombine.high %v1259_v30, %v1263_v32  ;;  %v1215_v21 = vld [vmem:[#allocation17 + $0x620] sm:$0xff]  ;;  %v5094_v32 = vsub.s32 2, %v5058_v7 }
 0x1ac   :  { %2602 = vmatpush1.bf16.msra.mxu1 %v4055_v37  ;;  %2643 = vmatpush1.bf16.msra.mxu0 %v4183_v38  ;;  %v1127_v37 = vld [vmem:[#allocation17 + $0x360] sm:$0xff] }
 0x1ad   :  { %2603 = vmatprep.subr.bf16.mxu1 %v4048_v43  ;;  %2644 = vmatprep.subr.bf16.mxu0 %v4176_v47  ;;  %v1251_v38 = vld [vmem:[#allocation17 + $0x740] sm:$0xff]  ;;  %v4120_v39 = vcombine.high %v1123_v36, %v1127_v37  ;;  %v4119_v41 = vcombine.low %v1123_v36, %v1127_v37 }
 0x1ae   :  { %v4247_v42 = vcombine.low %v1251_v38, %v1255_v40  ;;  %v4248_v43 = vcombine.high %v1251_v38, %v1255_v40 }
 0x1b0   :  { %2604 = vmatpush1.bf16.msra.mxu1 %v4047_v45  ;;  %2645 = vmatpush1.bf16.msra.mxu0 %v4175_v46  ;;  %v1119_v45 = vld [vmem:[#allocation17 + $0x320] sm:$0xff] }
 0x1b1   :  { %2605 = vmatprep.subr.bf16.mxu1 %v4040_v51  ;;  %2646 = vmatprep.subr.bf16.mxu0 %v4168_v55  ;;  %v1243_v46 = vld [vmem:[#allocation17 + $0x700] sm:$0xff]  ;;  %v4112_v47 = vcombine.high %v1115_v44, %v1119_v45  ;;  %v4111_v49 = vcombine.low %v1115_v44, %v1119_v45 }
 0x1b2   :  { %v4239_v50 = vcombine.low %v1243_v46, %v1247_v48  ;;  %v4240_v51 = vcombine.high %v1243_v46, %v1247_v48 }
 0x1b4   :  { %2606 = vmatpush1.bf16.msra.mxu1 %v4039_v53  ;;  %2647 = vmatpush1.bf16.msra.mxu0 %v4167_v54  ;;  %v1111_v53 = vld [vmem:[#allocation17 + $0x2e0] sm:$0xff] }
 0x1b5   :  { %2607 = vmatprep.subr.bf16.mxu1 %v4032_v60  ;;  %2648 = vmatprep.subr.bf16.mxu0 %v4160_v0  ;;  %v1235_v54 = vld [vmem:[#allocation17 + $0x6c0] sm:$0xff]  ;;  %v4104_v55 = vcombine.high %v1107_v52, %v1111_v53  ;;  %v4103_v58 = vcombine.low %v1107_v52, %v1111_v53 }
 0x1b6   :  { %v4231_v59 = vcombine.low %v1235_v54, %v1239_v56  ;;  %v4232_v60 = vcombine.high %v1235_v54, %v1239_v56 }
 0x1b8   :  { %2608 = vmatpush1.bf16.msra.mxu1 %v4031_v62  ;;  %2649 = vmatpush1.bf16.msra.mxu0 %v4159_v63  ;;  %v1103_v62 = vld [vmem:[#allocation17 + $0x2a0] sm:$0xff] }
 0x1b9   :  { %2609 = vmatprep.subr.bf16.mxu1 %v4024_v4  ;;  %2650 = vmatprep.subr.bf16.mxu0 %v4152_v11  ;;  %v1227_v63 = vld [vmem:[#allocation17 + $0x680] sm:$0xff]  ;;  %v4096_v0 = vcombine.high %v1099_v61, %v1103_v62  ;;  %v4095_v2 = vcombine.low %v1099_v61, %v1103_v62 }
 0x1ba   :  { %v4223_v3 = vcombine.low %v1227_v63, %v1231_v1  ;;  %v4224_v4 = vcombine.high %v1227_v63, %v1231_v1 }
 0x1bc   :  { %2610 = vmatpush1.bf16.msra.mxu1 %v4023_v6  ;;  %2651 = vmatpush1.bf16.msra.mxu0 %v4151_v9  ;;  %v1095_v6 = vld [vmem:[#allocation17 + $0x260] sm:$0xff] }
 0x1bd   :  { %2611 = vmatprep.subr.bf16.mxu1 %v4016_v15  ;;  %2652 = vmatprep.subr.bf16.mxu0 %v4144_v19  ;;  %v1219_v9 = vld [vmem:[#allocation17 + $0x640] sm:$0xff]  ;;  %v4088_v11 = vcombine.high %v1091_v5, %v1095_v6  ;;  %v4087_v13 = vcombine.low %v1091_v5, %v1095_v6 }
 0x1be   :  { %v4215_v14 = vcombine.low %v1219_v9, %v1223_v12  ;;  %v4216_v15 = vcombine.high %v1219_v9, %v1223_v12 }
 0x1c0   :  { %2612 = vmatpush1.bf16.msra.mxu1 %v4015_v17  ;;  %2653 = vmatpush1.bf16.msra.mxu0 %v4143_v18  ;;  %v1087_v17 = vld [vmem:[#allocation17 + $0x220] sm:$0xff] }
 0x1c1   :  { %2613 = vmatprep.subr.bf16.mxu1 %v4136_v22  ;;  %2654 = vmatprep.subr.bf16.mxu0 %v4264_v27  ;;  %v1211_v18 = vld [vmem:[#allocation17 + $0x600] sm:$0xff]  ;;  %v4079_v19 = vcombine.low %v1083_v16, %v1087_v17  ;;  %v4080_v20 = vcombine.high %v1083_v16, %v1087_v17 }
 0x1c2   :  { %v4207_v22 = vcombine.low %v1211_v18, %v1215_v21  ;;  %v4208_v23 = vcombine.high %v1211_v18, %v1215_v21 }
 0x1c4   :  { %2614 = vmatpush2.bf16.msra.mxu1 %v4135_v25  ;;  %2655 = vmatpush2.bf16.msra.mxu0 %v4263_v26  ;;  %v5079_v25 = vld [vmem:[#allocation17 + $0x1e8] sm:$0xff] }
 0x1c5   :  { %2615 = vmatprep.subr.bf16.mxu1 %v4128_v31  ;;  %2656 = vmatprep.subr.bf16.mxu0 %v4256_v35  ;;  %v5081_v26 = vld [vmem:[#allocation17 + $0x5c8] sm:$0xff]  ;;  %v4074_v27 = vcombine.high %v5077_v24, %v5079_v25  ;;  %v4073_v29 = vcombine.low %v5077_v24, %v5079_v25 }
 0x1c6   :  { %v4201_v30 = vcombine.low %v5081_v26, %v5085_v28  ;;  %v4202_v31 = vcombine.high %v5081_v26, %v5085_v28 }
 0x1c8   :  { %2616 = vmatpush2.bf16.msra.mxu1 %v4127_v33  ;;  %2657 = vmatpush2.bf16.msra.mxu0 %v4255_v34  ;;  %v433_v33 = vld [vmem:[#allocation13] sm:$0xf]  ;;  %v5097_v34 = vsub.s32 3, %v5058_v7 }
 0x1c9   :  { %2617 = vmatprep.subr.bf16.mxu1 %v4120_v39  ;;  %2658 = vmatprep.subr.bf16.mxu0 %v4248_v43  ;;  %v438_v35 = vrot.slane %v433_v33, %v5061_v8  ;;  %v446_v36 = vrot.slane %v433_v33, %v5094_v32  ;;  %v442_v37 = vrot.slane %v433_v33, %v5064_v10 }
 0x1ca   :  { %v450_v38 = vrot.slane %v433_v33, %v5097_v34 }
 0x1cc   :  { %2618 = vmatpush2.bf16.msra.mxu1 %v4119_v41  ;;  %2659 = vmatpush2.bf16.msra.mxu0 %v4247_v42 }
 0x1cd   :  { %2619 = vmatprep.subr.bf16.mxu1 %v4112_v47  ;;  %2660 = vmatprep.subr.bf16.mxu0 %v4240_v51 }
 0x1d0   :  { %2620 = vmatpush2.bf16.msra.mxu1 %v4111_v49  ;;  %2661 = vmatpush2.bf16.msra.mxu0 %v4239_v50 }
 0x1d1   :  { %2621 = vmatprep.subr.bf16.mxu1 %v4104_v55  ;;  %2662 = vmatprep.subr.bf16.mxu0 %v4232_v60 }
 0x1d4   :  { %2622 = vmatpush2.bf16.msra.mxu1 %v4103_v58  ;;  %2663 = vmatpush2.bf16.msra.mxu0 %v4231_v59 }
 0x1d5   :  { %2623 = vmatprep.subr.bf16.mxu1 %v4096_v0  ;;  %2664 = vmatprep.subr.bf16.mxu0 %v4224_v4 }
 0x1d8   :  { %2624 = vmatpush2.bf16.msra.mxu1 %v4095_v2  ;;  %2665 = vmatpush2.bf16.msra.mxu0 %v4223_v3 }
 0x1d9   :  { %2625 = vmatprep.subr.bf16.mxu1 %v4088_v11  ;;  %2666 = vmatprep.subr.bf16.mxu0 %v4216_v15 }
 0x1dc   :  { %2626 = vmatpush2.bf16.msra.mxu1 %v4087_v13  ;;  %2667 = vmatpush2.bf16.msra.mxu0 %v4215_v14 }
 0x1dd   :  { %2627 = vmatprep.subr.bf16.mxu1 %v4080_v20  ;;  %2668 = vmatprep.subr.bf16.mxu0 %v4208_v23 }
 0x1e0   :  { %2628 = vmatpush2.bf16.msra.mxu1 %v4079_v19  ;;  %2669 = vmatpush2.bf16.msra.mxu0 %v4207_v22 }
 0x1e1   :  { %2679 = vmatprep.subr.bf16.mxu1 %v4074_v27  ;;  %2720 = vmatprep.subr.bf16.mxu0 %v4202_v31 }
 0x263   :  { %v809_v39 = vpop.f32.mrf.mxu1  ;;  %v850_v40 = vpop.f32.mrf.mxu0 }
 0x264   :  { %v810_v41 = vadd.f32 %v809_v39, %v438_v35  ;;  %v851_v42 = vadd.f32 %v850_v40, %v446_v36 }
 0x265   :  { %v811_v43 = vpop.f32.mrf.mxu1  ;;  %v852_v44 = vpop.f32.mrf.mxu0 }
 0x266   :  { %v859_v45 = vrot.slane %v810_v41, 4  ;;  %v871_v46 = vrot.slane %v851_v42, 4  ;;  %v812_v47 = vadd.f32 %v811_v43, %v442_v37  ;;  %v853_v48 = vadd.f32 %v852_v44, %v450_v38 }
 0x267   :  { %v813_v49 = vpop.f32.mrf.mxu1  ;;  %v854_v50 = vpop.f32.mrf.mxu0 }
 0x268   :  { %v860_v51 = vadd.f32 %v859_v45, %v810_v41  ;;  %v872_v52 = vadd.f32 %v871_v46, %v851_v42  ;;  %v865_v53 = vrot.slane %v812_v47, 4  ;;  %v877_v54 = vrot.slane %v853_v48, 4 }
 0x269   :  { %v814_v55 = vpop.f32.mrf.mxu1  ;;  %v855_v56 = vpop.f32.mrf.mxu0 }
 0x26a   :  { %v861_v58 = vrot.slane %v860_v51, 2  ;;  %v873_v59 = vrot.slane %v872_v52, 2  ;;  %v866_v60 = vadd.f32 %v865_v53, %v812_v47  ;;  %v878_v61 = vadd.f32 %v877_v54, %v853_v48 }
 0x26c   :  { %v862_v62 = vadd.f32 %v861_v58, %v860_v51  ;;  %v874_v63 = vadd.f32 %v873_v59, %v872_v52  ;;  %v867_v0 = vrot.slane %v866_v60, 2  ;;  %v879_v1 = vrot.slane %v878_v61, 2 }
 0x26e   :  { %v863_v2 = vrot.slane %v862_v62, 1  ;;  %v875_v3 = vrot.slane %v874_v63, 1  ;;  %v868_v4 = vadd.f32 %v867_v0, %v866_v60  ;;  %v880_v5 = vadd.f32 %v879_v1, %v878_v61 }
 0x270   :  { %v864_v6 = vadd.f32 %v863_v2, %v862_v62  ;;  %v876_v9 = vadd.f32 %v875_v3, %v874_v63  ;;  %v869_v11 = vrot.slane %v868_v4, 1  ;;  %v881_v12 = vrot.slane %v880_v5, 1 }
 0x272   :  { %v883_v13 = vmul.f32 0.125, %v864_v6  ;;  %v885_v14 = vmul.f32 0.125, %v876_v9  ;;  %v870_v15 = vadd.f32 %v869_v11, %v868_v4  ;;  %v882_v16 = vadd.f32 %v881_v12, %v880_v5 }
 0x274   :  { %v5103_v17 = vsub.f32 %v810_v41, %v883_v13  ;;  %v5105_v18 = vsub.f32 %v851_v42, %v885_v14  ;;  %v884_v19 = vmul.f32 0.125, %v870_v15  ;;  %v886_v20 = vmul.f32 0.125, %v882_v16  ;;  %v857_v16 = vld [vmem:[#allocation14] sm:$0xf] }
 0x276   :  { %v891_v21 = vmul.f32 %v5103_v17, %v5103_v17  ;;  %v893_v22 = vmul.f32 %v5105_v18, %v5105_v18  ;;  %v888_v23 = vsub.f32 %v812_v47, %v884_v19  ;;  %v890_v27 = vsub.f32 %v853_v48, %v886_v20  ;;  %v858_v20 = vld [vmem:[#allocation16] sm:$0xf] }
 0x278   :  { %v895_v31 = vrot.slane %v891_v21, 4  ;;  %v907_v33 = vrot.slane %v893_v22, 4  ;;  %v892_v35 = vmul.f32 %v888_v23, %v888_v23  ;;  %v894_v36 = vmul.f32 %v890_v27, %v890_v27 }
 0x27a   :  { %v896_v37 = vadd.f32 %v895_v31, %v891_v21  ;;  %v908_v38 = vadd.f32 %v907_v33, %v893_v22  ;;  %v901_v39 = vrot.slane %v892_v35, 4  ;;  %v913_v40 = vrot.slane %v894_v36, 4 }
 0x27b   :  { %v994_v22 = vrot.slane %v858_v20, %v5064_v10  ;;  %v1002_v31 = vrot.slane %v858_v20, %v5097_v34  ;;  %v990_v33 = vrot.slane %v858_v20, %v5061_v8 }
 0x27c   :  { %v897_v41 = vrot.slane %v896_v37, 2  ;;  %v909_v42 = vrot.slane %v908_v38, 2  ;;  %v902_v43 = vadd.f32 %v901_v39, %v892_v35  ;;  %v914_v44 = vadd.f32 %v913_v40, %v894_v36 }
 0x27d   :  { %v998_v35 = vrot.slane %v858_v20, %v5094_v32  ;;  %v1164_v20 = vld [vmem:[#allocation17 + $0x488] sm:$0xff] }
 0x27e   :  { %v898_v45 = vadd.f32 %v897_v41, %v896_v37  ;;  %v910_v46 = vadd.f32 %v909_v42, %v908_v38  ;;  %v903_v49 = vrot.slane %v902_v43, 2  ;;  %v915_v50 = vrot.slane %v914_v44, 2 }
 0x280   :  { %v899_v51 = vrot.slane %v898_v45, 1  ;;  %v911_v52 = vrot.slane %v910_v46, 1  ;;  %v904_v47 = vadd.f32 %v903_v49, %v902_v43  ;;  %v916_v48 = vadd.f32 %v915_v50, %v914_v44 }
 0x282   :  { %v900_v53 = vadd.f32 %v899_v51, %v898_v45  ;;  %v912_v54 = vadd.f32 %v911_v52, %v910_v46  ;;  %v905_v55 = vrot.slane %v904_v47, 1  ;;  %v917_v56 = vrot.slane %v916_v48, 1 }
 0x284   :  { %v919_v58 = vmul.f32 0.125, %v900_v53  ;;  %v921_v59 = vmul.f32 0.125, %v912_v54  ;;  %v906_v60 = vadd.f32 %v905_v55, %v904_v47  ;;  %v918_v61 = vadd.f32 %v917_v56, %v916_v48  ;;  %v1068_v48 = vld [vmem:[#allocation17 + $0x188] sm:$0xff] }
 0x285   :  { %v1072_v53 = vld [vmem:[#allocation17 + $0x1a8] sm:$0xff] }
 0x286   :  { %v923_v62 = vadd.f32 1e-05, %v919_v58  ;;  %v925_v63 = vadd.f32 1e-05, %v921_v59  ;;  %v920_v0 = vmul.f32 0.125, %v906_v60  ;;  %v922_v1 = vmul.f32 0.125, %v918_v61 }
 0x287   :  { %v1196_v54 = vld [vmem:[#allocation17 + $0x588] sm:$0xff]  ;;  %v4066_v58 = vcombine.high %v1068_v48, %v1072_v53 }
 0x288   :  { %4617 = vrsqrt.f32 %v923_v62  ;;  %v924_v2 = vadd.f32 1e-05, %v920_v0  ;;  %v926_v3 = vadd.f32 1e-05, %v922_v1  ;;  %v1200_v55 = vld [vmem:[#allocation17 + $0x5a8] sm:$0xff] }
 0x289   :  { %4619 = vrsqrt.f32 %v925_v63  ;;  %v4194_v59 = vcombine.high %v1196_v54, %v1200_v55  ;;  %v1064_v60 = vld [vmem:[#allocation17 + $0x168] sm:$0xff]  ;;  %v4065_v63 = vcombine.low %v1068_v48, %v1072_v53  ;;  %v4193_v0 = vcombine.low %v1196_v54, %v1200_v55 }
 0x28a   :  { %4621 = vrsqrt.f32 %v924_v2  ;;  %v1188_v61 = vld [vmem:[#allocation17 + $0x548] sm:$0xff] }
 0x28b   :  { %4623 = vrsqrt.f32 %v926_v3  ;;  %v1192_v62 = vld [vmem:[#allocation17 + $0x568] sm:$0xff] }
 0x28c   :  { %v4186_v2 = vcombine.high %v1188_v61, %v1192_v62  ;;  %v1052_v3 = vld [vmem:[#allocation17 + $0x108] sm:$0xff]  ;;  %v4185_v25 = vcombine.low %v1188_v61, %v1192_v62 }
 0x28d   :  { %v1140_v48 = vld [vmem:[#allocation17 + $0x3c8] sm:$0xff] }
 0x28e   :  { %v1144_v53 = vld [vmem:[#allocation17 + $0x3e8] sm:$0xff] }
 0x28f   :  { %v1268_v54 = vld [vmem:[#allocation17 + $0x7c8] sm:$0xff] }
 0x290   :  { %v1272_v55 = vld [vmem:[#allocation17 + $0x7e8] sm:$0xff] }
 0x291   :  { %v1132_v61 = vld [vmem:[#allocation17 + $0x388] sm:$0xff] }
 0x292   :  { %v1136_v62 = vld [vmem:[#allocation17 + $0x3a8] sm:$0xff] }
 0x295   :  { %v4618_v4 = vpop.eup %4617 }
 0x296   :  { %v4620_v5 = vpop.eup %4619 }
 0x297   :  { %v4622_v6 = vpop.eup %4621 }
 0x298   :  { %v4624_v9 = vpop.eup %4623  ;;  %v935_v11 = vcombine.low %v4618_v4, %v4622_v6  ;;  %v1056_v4 = vld [vmem:[#allocation17 + $0x128] sm:$0xff] }
 0x299   :  { %v936_v12 = vcombine.low %v4620_v5, %v4624_v9  ;;  %v1180_v5 = vld [vmem:[#allocation17 + $0x508] sm:$0xff]  ;;  %v4050_v26 = vcombine.high %v1052_v3, %v1056_v4 }
 0x29a   :  { %v943_v13 = vrot.slane %v935_v11, %v5069_v57  ;;  %v1184_v6 = vld [vmem:[#allocation17 + $0x528] sm:$0xff] }
 0x29b   :  { %v950_v14 = vrot.slane %v936_v12, %v5069_v57  ;;  %v4178_v28 = vcombine.high %v1180_v5, %v1184_v6  ;;  %v1172_v9 = vld [vmem:[#allocation17 + $0x4c8] sm:$0xff]  ;;  %v4049_v12 = vcombine.low %v1052_v3, %v1056_v4  ;;  %v4130_v3 = vcombine.high %v1132_v61, %v1136_v62 }
 0x29c   :  { %v1176_v11 = vld [vmem:[#allocation17 + $0x4e8] sm:$0xff] }
 0x29d   :  { %v951_v15 = vcombine.low %v943_v13, %v950_v14  ;;  %v4177_v13 = vcombine.low %v1180_v5, %v1184_v6  ;;  %v1124_v5 = vld [vmem:[#allocation17 + $0x348] sm:$0xff] }
 0x29e   :  { %v1128_v6 = vld [vmem:[#allocation17 + $0x368] sm:$0xff] }
 0x29f   :  { %v958_v19 = vrot.slane %v951_v15, %v5069_v57  ;;  %v4170_v15 = vcombine.high %v1172_v9, %v1176_v11 }
 0x2a1   :  { %v960_v21 = vmul.f32 %v958_v19, %v857_v16  ;;  %v1036_v16 = vld [vmem:[#allocation17 + $0x88] sm:$0xff] }
 0x2a2   :  { %v1040_v19 = vld [vmem:[#allocation17 + $0xa8] sm:$0xff] }
 0x2a3   :  { %v977_v36 = vrot.slane %v960_v21, %v5097_v34  ;;  %v969_v37 = vrot.slane %v960_v21, %v5064_v10  ;;  %v965_v38 = vrot.slane %v960_v21, %v5061_v8  ;;  %v973_v39 = vrot.slane %v960_v21, %v5094_v32  ;;  %v1168_v21 = vld [vmem:[#allocation17 + $0x4a8] sm:$0xff] }
 0x2a5   :  { %v985_v40 = vmul.f32 %v977_v36, %v890_v27  ;;  %v983_v41 = vmul.f32 %v969_v37, %v888_v23  ;;  %v982_v42 = vmul.f32 %v965_v38, %v5103_v17  ;;  %v984_v43 = vmul.f32 %v973_v39, %v5105_v18  ;;  %v1060_v18 = vld [vmem:[#allocation17 + $0x148] sm:$0xff] }
 0x2a6   :  { %v4058_v1 = vcombine.high %v1060_v18, %v1064_v60  ;;  %v4057_v24 = vcombine.low %v1060_v18, %v1064_v60  ;;  %v1028_v36 = vld [vmem:[#allocation17 + $0x48] sm:$0xff]  ;;  %v4266_v60 = vcombine.high %v1268_v54, %v1272_v55 }
 0x2a7   :  { %v1008_v44 = vadd.f32 %v994_v22, %v983_v41  ;;  %v1010_v45 = vadd.f32 %v1002_v31, %v985_v40  ;;  %v1007_v46 = vadd.f32 %v990_v33, %v982_v42  ;;  %v1009_v49 = vadd.f32 %v998_v35, %v984_v43  ;;  %v1032_v37 = vld [vmem:[#allocation17 + $0x68] sm:$0xff] }
 0x2a8   :  { %v4169_v31 = vcombine.low %v1172_v9, %v1176_v11  ;;  %v4034_v33 = vcombine.high %v1036_v16, %v1040_v19  ;;  %v4162_v35 = vcombine.high %v1164_v20, %v1168_v21  ;;  %v1156_v38 = vld [vmem:[#allocation17 + $0x448] sm:$0xff]  ;;  %v4033_v40 = vcombine.low %v1036_v16, %v1040_v19 }
 0x2a9   :  { %v1012_v50 = vmax.f32 %v1008_v44, 0.0  ;;  %v1014_v51 = vmax.f32 %v1010_v45, 0.0  ;;  %v1011_v52 = vmax.f32 %v1007_v46, 0.0  ;;  %v1013_v47 = vmax.f32 %v1009_v49, 0.0  ;;  %v1160_v39 = vld [vmem:[#allocation17 + $0x468] sm:$0xff] }
 0x2aa   :  { %v4161_v41 = vcombine.low %v1164_v20, %v1168_v21  ;;  %v4026_v42 = vcombine.high %v1028_v36, %v1032_v37  ;;  %v4154_v43 = vcombine.high %v1156_v38, %v1160_v39  ;;  %v1020_v44 = vld [vmem:[#allocation17 + $0x8] sm:$0xff] }
 0x2ab   :  { %v5124_v56 = vpack.c.bf16 %v1012_v50, %v1012_v50  ;;  %v5126_v27 = vpack.c.bf16 %v1014_v51, %v1014_v51  ;;  %v5128_v23 = vpack.c.bf16 %v1011_v52, %v1011_v52  ;;  %v5130_v17 = vpack.c.bf16 %v1013_v47, %v1013_v47  ;;  %v1024_v45 = vld [vmem:[#allocation17 + $0x28] sm:$0xff] }
 0x2ac   :  { %v1148_v46 = vld [vmem:[#allocation17 + $0x408] sm:$0xff]  ;;  %v4025_v50 = vcombine.low %v1028_v36, %v1032_v37  ;;  %v4153_v51 = vcombine.low %v1156_v38, %v1160_v39  ;;  %v4018_v52 = vcombine.high %v1020_v44, %v1024_v45  ;;  %v4017_v18 = vcombine.low %v1020_v44, %v1024_v45 }
 0x2ad   :  { %2629 = vmatprep.mubr.bf16.mxu1 %v5124_v56  ;;  %2670 = vmatprep.mubr.bf16.mxu0 %v5126_v27  ;;  %v1152_v49 = vld [vmem:[#allocation17 + $0x428] sm:$0xff] }
 0x2ae   :  { %2630 = vmatmul.mubr.bf16.vlgmr.msra.gmra.mxu1 %v5128_v23  ;;  %2671 = vmatmul.mubr.bf16.vlgmr.msra.gmra.mxu0 %v5130_v17  ;;  %v4146_v47 = vcombine.high %v1148_v46, %v1152_v49  ;;  %v1116_v9 = vld [vmem:[#allocation17 + $0x308] sm:$0xff] }
 0x2af   :  { %2680 = vmatpush1.bf16.msra.mxu1 %v4073_v29  ;;  %2721 = vmatpush1.bf16.msra.mxu0 %v4201_v30  ;;  %v1044_v29 = vld [vmem:[#allocation17 + $0xc8] sm:$0xff] }
 0x2b0   :  { %2711 = vmatprep.mubr.bf16.mxu1 %v5124_v56  ;;  %2752 = vmatprep.mubr.bf16.mxu0 %v5126_v27  ;;  %v1048_v30 = vld [vmem:[#allocation17 + $0xe8] sm:$0xff] }
 0x2b1   :  { %2681 = vmatprep.subr.bf16.mxu1 %v4066_v58  ;;  %2722 = vmatprep.subr.bf16.mxu0 %v4194_v59  ;;  %v4042_v14 = vcombine.high %v1044_v29, %v1048_v30  ;;  %v4041_v22 = vcombine.low %v1044_v29, %v1048_v30  ;;  %v4145_v58 = vcombine.low %v1148_v46, %v1152_v49  ;;  %v1120_v11 = vld [vmem:[#allocation17 + $0x328] sm:$0xff] }
 0x2b2   :  { %v4138_v59 = vcombine.high %v1140_v48, %v1144_v53  ;;  %v4122_v29 = vcombine.high %v1124_v5, %v1128_v6  ;;  %v4114_v16 = vcombine.high %v1116_v9, %v1120_v11  ;;  %v1108_v20 = vld [vmem:[#allocation17 + $0x2c8] sm:$0xff] }
 0x2b3   :  { %2682 = vmatpush1.bf16.msra.mxu1 %v4065_v63  ;;  %2723 = vmatpush1.bf16.msra.mxu0 %v4193_v0  ;;  %v1260_v63 = vld [vmem:[#allocation17 + $0x788] sm:$0xff] }
 0x2b4   :  { %2683 = vmatprep.subr.bf16.mxu1 %v4058_v1  ;;  %2724 = vmatprep.subr.bf16.mxu0 %v4186_v2  ;;  %v1264_v0 = vld [vmem:[#allocation17 + $0x7a8] sm:$0xff]  ;;  %v4137_v1 = vcombine.low %v1140_v48, %v1144_v53  ;;  %v4265_v2 = vcombine.low %v1268_v54, %v1272_v55 }
 0x2b5   :  { %v4258_v4 = vcombine.high %v1260_v63, %v1264_v0  ;;  %v1112_v21 = vld [vmem:[#allocation17 + $0x2e8] sm:$0xff] }
 0x2b6   :  { %v4106_v36 = vcombine.high %v1108_v20, %v1112_v21  ;;  %v1100_v38 = vld [vmem:[#allocation17 + $0x288] sm:$0xff] }
 0x2b7   :  { %2684 = vmatpush1.bf16.msra.mxu1 %v4057_v24  ;;  %2725 = vmatpush1.bf16.msra.mxu0 %v4185_v25  ;;  %v1252_v24 = vld [vmem:[#allocation17 + $0x748] sm:$0xff] }
 0x2b8   :  { %2685 = vmatprep.subr.bf16.mxu1 %v4050_v26  ;;  %2726 = vmatprep.subr.bf16.mxu0 %v4178_v28  ;;  %v1256_v25 = vld [vmem:[#allocation17 + $0x768] sm:$0xff]  ;;  %v4129_v26 = vcombine.low %v1132_v61, %v1136_v62  ;;  %v4257_v28 = vcombine.low %v1260_v63, %v1264_v0  ;;  %v1077_v63 = vld [vmem:[#allocation17 + $0x1d0] sm:$0xff] }
 0x2b9   :  { %v4250_v30 = vcombine.high %v1252_v24, %v1256_v25  ;;  %v1104_v39 = vld [vmem:[#allocation17 + $0x2a8] sm:$0xff]  ;;  %v1081_v0 = vld [vmem:[#allocation17 + $0x1f0] sm:$0xff] }
 0x2ba   :  { %v4098_v44 = vcombine.high %v1100_v38, %v1104_v39  ;;  %v1092_v46 = vld [vmem:[#allocation17 + $0x248] sm:$0xff] }
 0x2bb   :  { %2686 = vmatpush1.bf16.msra.mxu1 %v4049_v12  ;;  %2727 = vmatpush1.bf16.msra.mxu0 %v4177_v13  ;;  %v1244_v12 = vld [vmem:[#allocation17 + $0x708] sm:$0xff] }
 0x2bc   :  { %2687 = vmatprep.subr.bf16.mxu1 %v4042_v14  ;;  %2728 = vmatprep.subr.bf16.mxu0 %v4170_v15  ;;  %v1248_v13 = vld [vmem:[#allocation17 + $0x728] sm:$0xff]  ;;  %v4121_v14 = vcombine.low %v1124_v5, %v1128_v6  ;;  %v4249_v15 = vcombine.low %v1252_v24, %v1256_v25  ;;  %v4076_v5 = vcombine.high %v1077_v63, %v1081_v0  ;;  %v1069_v24 = vld [vmem:[#allocation17 + $0x190] sm:$0xff] }
 0x2bd   :  { %v4242_v19 = vcombine.high %v1244_v12, %v1248_v13  ;;  %v1096_v49 = vld [vmem:[#allocation17 + $0x268] sm:$0xff]  ;;  %v1073_v25 = vld [vmem:[#allocation17 + $0x1b0] sm:$0xff] }
 0x2be   :  { %v4090_v48 = vcombine.high %v1092_v46, %v1096_v49  ;;  %v1084_v54 = vld [vmem:[#allocation17 + $0x208] sm:$0xff] }
 0x2bf   :  { %2688 = vmatpush1.bf16.msra.mxu1 %v4041_v22  ;;  %2729 = vmatpush1.bf16.msra.mxu0 %v4169_v31  ;;  %v1236_v22 = vld [vmem:[#allocation17 + $0x6c8] sm:$0xff] }
 0x2c0   :  { %2689 = vmatprep.subr.bf16.mxu1 %v4034_v33  ;;  %2730 = vmatprep.subr.bf16.mxu0 %v4162_v35  ;;  %v1240_v31 = vld [vmem:[#allocation17 + $0x6e8] sm:$0xff]  ;;  %v4113_v33 = vcombine.low %v1116_v9, %v1120_v11  ;;  %v4241_v35 = vcombine.low %v1244_v12, %v1248_v13  ;;  %v4068_v9 = vcombine.high %v1069_v24, %v1073_v25  ;;  %v1061_v12 = vld [vmem:[#allocation17 + $0x150] sm:$0xff] }
 0x2c1   :  { %v4234_v37 = vcombine.high %v1236_v22, %v1240_v31  ;;  %v1088_v55 = vld [vmem:[#allocation17 + $0x228] sm:$0xff]  ;;  %v1065_v13 = vld [vmem:[#allocation17 + $0x170] sm:$0xff] }
 0x2c2   :  { %v4082_v61 = vcombine.high %v1084_v54, %v1088_v55 }
 0x2c3   :  { %2690 = vmatpush1.bf16.msra.mxu1 %v4033_v40  ;;  %2731 = vmatpush1.bf16.msra.mxu0 %v4161_v41  ;;  %v1228_v40 = vld [vmem:[#allocation17 + $0x688] sm:$0xff] }
 0x2c4   :  { %2691 = vmatprep.subr.bf16.mxu1 %v4026_v42  ;;  %2732 = vmatprep.subr.bf16.mxu0 %v4154_v43  ;;  %v1232_v41 = vld [vmem:[#allocation17 + $0x6a8] sm:$0xff]  ;;  %v4105_v42 = vcombine.low %v1108_v20, %v1112_v21  ;;  %v4233_v43 = vcombine.low %v1236_v22, %v1240_v31  ;;  %v4060_v20 = vcombine.high %v1061_v12, %v1065_v13  ;;  %v1053_v22 = vld [vmem:[#allocation17 + $0x110] sm:$0xff] }
 0x2c5   :  { %v4226_v45 = vcombine.high %v1228_v40, %v1232_v41  ;;  %v1057_v31 = vld [vmem:[#allocation17 + $0x130] sm:$0xff] }
 0x2c7   :  { %2692 = vmatpush1.bf16.msra.mxu1 %v4025_v50  ;;  %2733 = vmatpush1.bf16.msra.mxu0 %v4153_v51  ;;  %v1220_v50 = vld [vmem:[#allocation17 + $0x648] sm:$0xff] }
 0x2c8   :  { %2693 = vmatprep.subr.bf16.mxu1 %v4018_v52  ;;  %2734 = vmatprep.subr.bf16.mxu0 %v4146_v47  ;;  %v1224_v51 = vld [vmem:[#allocation17 + $0x668] sm:$0xff]  ;;  %v4097_v52 = vcombine.low %v1100_v38, %v1104_v39  ;;  %v4225_v47 = vcombine.low %v1228_v40, %v1232_v41  ;;  %v4052_v38 = vcombine.high %v1053_v22, %v1057_v31  ;;  %v1045_v40 = vld [vmem:[#allocation17 + $0xd0] sm:$0xff] }
 0x2c9   :  { %v4218_v53 = vcombine.high %v1220_v50, %v1224_v51  ;;  %v1049_v41 = vld [vmem:[#allocation17 + $0xf0] sm:$0xff] }
 0x2cb   :  { %2694 = vmatpush1.bf16.msra.mxu1 %v4017_v18  ;;  %2735 = vmatpush1.bf16.msra.mxu0 %v4145_v58  ;;  %v1212_v18 = vld [vmem:[#allocation17 + $0x608] sm:$0xff] }
 0x2cc   :  { %2695 = vmatprep.subr.bf16.mxu1 %v4138_v59  ;;  %2736 = vmatprep.subr.bf16.mxu0 %v4266_v60  ;;  %v1216_v58 = vld [vmem:[#allocation17 + $0x628] sm:$0xff]  ;;  %v4089_v59 = vcombine.low %v1092_v46, %v1096_v49  ;;  %v4217_v60 = vcombine.low %v1220_v50, %v1224_v51  ;;  %v4044_v46 = vcombine.high %v1045_v40, %v1049_v41  ;;  %v1037_v50 = vld [vmem:[#allocation17 + $0x90] sm:$0xff] }
 0x2cd   :  { %v4210_v62 = vcombine.high %v1212_v18, %v1216_v58  ;;  %v1041_v51 = vld [vmem:[#allocation17 + $0xb0] sm:$0xff] }
 0x2cf   :  { %2696 = vmatpush2.bf16.msra.mxu1 %v4137_v1  ;;  %2737 = vmatpush2.bf16.msra.mxu0 %v4265_v2  ;;  %v1205_v1 = vld [vmem:[#allocation17 + $0x5d0] sm:$0xff] }
 0x2d0   :  { %2697 = vmatprep.subr.bf16.mxu1 %v4130_v3  ;;  %2738 = vmatprep.subr.bf16.mxu0 %v4258_v4  ;;  %v1209_v2 = vld [vmem:[#allocation17 + $0x5f0] sm:$0xff]  ;;  %v4081_v3 = vcombine.low %v1084_v54, %v1088_v55  ;;  %v4209_v4 = vcombine.low %v1212_v18, %v1216_v58  ;;  %v4036_v54 = vcombine.high %v1037_v50, %v1041_v51 }
 0x2d1   :  { %v4204_v6 = vcombine.high %v1205_v1, %v1209_v2  ;;  %v1029_v18 = vld [vmem:[#allocation17 + $0x50] sm:$0xff] }
 0x2d2   :  { %v1033_v58 = vld [vmem:[#allocation17 + $0x70] sm:$0xff] }
 0x2d3   :  { %2698 = vmatpush2.bf16.msra.mxu1 %v4129_v26  ;;  %2739 = vmatpush2.bf16.msra.mxu0 %v4257_v28  ;;  %v1197_v26 = vld [vmem:[#allocation17 + $0x590] sm:$0xff] }
 0x2d4   :  { %2699 = vmatprep.subr.bf16.mxu1 %v4122_v29  ;;  %2740 = vmatprep.subr.bf16.mxu0 %v4250_v30  ;;  %v1201_v28 = vld [vmem:[#allocation17 + $0x5b0] sm:$0xff]  ;;  %v4075_v29 = vcombine.low %v1077_v63, %v1081_v0  ;;  %v4203_v30 = vcombine.low %v1205_v1, %v1209_v2  ;;  %v4028_v63 = vcombine.high %v1029_v18, %v1033_v58 }
 0x2d5   :  { %v4196_v11 = vcombine.high %v1197_v26, %v1201_v28  ;;  %v1021_v1 = vld [vmem:[#allocation17 + $0x10] sm:$0xff] }
 0x2d6   :  { %v1025_v2 = vld [vmem:[#allocation17 + $0x30] sm:$0xff] }
 0x2d7   :  { %2700 = vmatpush2.bf16.msra.mxu1 %v4121_v14  ;;  %2741 = vmatpush2.bf16.msra.mxu0 %v4249_v15  ;;  %v1189_v14 = vld [vmem:[#allocation17 + $0x550] sm:$0xff] }
 0x2d8   :  { %2701 = vmatprep.subr.bf16.mxu1 %v4114_v16  ;;  %2742 = vmatprep.subr.bf16.mxu0 %v4242_v19  ;;  %v1193_v15 = vld [vmem:[#allocation17 + $0x570] sm:$0xff]  ;;  %v4067_v16 = vcombine.low %v1069_v24, %v1073_v25  ;;  %v4195_v19 = vcombine.low %v1197_v26, %v1201_v28  ;;  %v4020_v24 = vcombine.high %v1021_v1, %v1025_v2 }
 0x2d9   :  { %v4188_v21 = vcombine.high %v1189_v14, %v1193_v15  ;;  %v1141_v26 = vld [vmem:[#allocation17 + $0x3d0] sm:$0xff] }
 0x2da   :  { %v1145_v28 = vld [vmem:[#allocation17 + $0x3f0] sm:$0xff] }
 0x2db   :  { %2702 = vmatpush2.bf16.msra.mxu1 %v4113_v33  ;;  %2743 = vmatpush2.bf16.msra.mxu0 %v4241_v35  ;;  %v1181_v33 = vld [vmem:[#allocation17 + $0x510] sm:$0xff] }
 0x2dc   :  { %2703 = vmatprep.subr.bf16.mxu1 %v4106_v36  ;;  %2744 = vmatprep.subr.bf16.mxu0 %v4234_v37  ;;  %v1185_v35 = vld [vmem:[#allocation17 + $0x530] sm:$0xff]  ;;  %v4059_v36 = vcombine.low %v1061_v12, %v1065_v13  ;;  %v4187_v37 = vcombine.low %v1189_v14, %v1193_v15  ;;  %v4140_v12 = vcombine.high %v1141_v26, %v1145_v28 }
 0x2dd   :  { %v4180_v39 = vcombine.high %v1181_v33, %v1185_v35  ;;  %v1133_v14 = vld [vmem:[#allocation17 + $0x390] sm:$0xff] }
 0x2de   :  { %v1137_v15 = vld [vmem:[#allocation17 + $0x3b0] sm:$0xff] }
 0x2df   :  { %2704 = vmatpush2.bf16.msra.mxu1 %v4105_v42  ;;  %2745 = vmatpush2.bf16.msra.mxu0 %v4233_v43  ;;  %v1173_v42 = vld [vmem:[#allocation17 + $0x4d0] sm:$0xff] }
 0x2e0   :  { %2705 = vmatprep.subr.bf16.mxu1 %v4098_v44  ;;  %2746 = vmatprep.subr.bf16.mxu0 %v4226_v45  ;;  %v1177_v43 = vld [vmem:[#allocation17 + $0x4f0] sm:$0xff]  ;;  %v4051_v44 = vcombine.low %v1053_v22, %v1057_v31  ;;  %v4179_v45 = vcombine.low %v1181_v33, %v1185_v35  ;;  %v4132_v22 = vcombine.high %v1133_v14, %v1137_v15 }
 0x2e1   :  { %v4172_v49 = vcombine.high %v1173_v42, %v1177_v43  ;;  %v1125_v33 = vld [vmem:[#allocation17 + $0x350] sm:$0xff] }
 0x2e2   :  { %v1129_v35 = vld [vmem:[#allocation17 + $0x370] sm:$0xff] }
 0x2e3   :  { %2706 = vmatpush2.bf16.msra.mxu1 %v4097_v52  ;;  %2747 = vmatpush2.bf16.msra.mxu0 %v4225_v47  ;;  %v1165_v52 = vld [vmem:[#allocation17 + $0x490] sm:$0xff] }
 0x2e4   :  { %2707 = vmatprep.subr.bf16.mxu1 %v4090_v48  ;;  %2748 = vmatprep.subr.bf16.mxu0 %v4218_v53  ;;  %v1169_v47 = vld [vmem:[#allocation17 + $0x4b0] sm:$0xff]  ;;  %v4043_v48 = vcombine.low %v1045_v40, %v1049_v41  ;;  %v4171_v53 = vcombine.low %v1173_v42, %v1177_v43  ;;  %v4124_v40 = vcombine.high %v1125_v33, %v1129_v35 }
 0x2e5   :  { %v4164_v55 = vcombine.high %v1165_v52, %v1169_v47  ;;  %v1117_v42 = vld [vmem:[#allocation17 + $0x310] sm:$0xff] }
 0x2e6   :  { %v1121_v43 = vld [vmem:[#allocation17 + $0x330] sm:$0xff] }
 0x2e7   :  { %2708 = vmatpush2.bf16.msra.mxu1 %v4089_v59  ;;  %2749 = vmatpush2.bf16.msra.mxu0 %v4217_v60  ;;  %v1157_v59 = vld [vmem:[#allocation17 + $0x450] sm:$0xff] }
 0x2e8   :  { %2709 = vmatprep.subr.bf16.mxu1 %v4082_v61  ;;  %2750 = vmatprep.subr.bf16.mxu0 %v4210_v62  ;;  %v1161_v60 = vld [vmem:[#allocation17 + $0x470] sm:$0xff]  ;;  %v4035_v61 = vcombine.low %v1037_v50, %v1041_v51  ;;  %v4163_v62 = vcombine.low %v1165_v52, %v1169_v47  ;;  %v4116_v50 = vcombine.high %v1117_v42, %v1121_v43 }
 0x2e9   :  { %v4156_v0 = vcombine.high %v1157_v59, %v1161_v60  ;;  %v1109_v52 = vld [vmem:[#allocation17 + $0x2d0] sm:$0xff] }
 0x2ea   :  { %v1113_v47 = vld [vmem:[#allocation17 + $0x2f0] sm:$0xff] }
 0x2eb   :  { %2710 = vmatpush2.bf16.msra.mxu1 %v4081_v3  ;;  %2751 = vmatpush2.bf16.msra.mxu0 %v4209_v4  ;;  %v1149_v3 = vld [vmem:[#allocation17 + $0x410] sm:$0xff] }
 0x2ec   :  { %2761 = vmatprep.subr.bf16.mxu1 %v4076_v5  ;;  %2802 = vmatprep.subr.bf16.mxu0 %v4204_v6  ;;  %v1153_v4 = vld [vmem:[#allocation17 + $0x430] sm:$0xff]  ;;  %v4027_v5 = vcombine.low %v1029_v18, %v1033_v58  ;;  %v4155_v6 = vcombine.low %v1157_v59, %v1161_v60  ;;  %v4108_v18 = vcombine.high %v1109_v52, %v1113_v47 }
 0x2ed   :  { %v4148_v25 = vcombine.high %v1149_v3, %v1153_v4  ;;  %v1101_v59 = vld [vmem:[#allocation17 + $0x290] sm:$0xff] }
 0x2ee   :  { %2712 = vmatmul.mubr.bf16.vlgmr.msra.gmra.mxu1 %v5128_v23  ;;  %2753 = vmatmul.mubr.bf16.vlgmr.msra.gmra.mxu0 %v5130_v17  ;;  %v1105_v60 = vld [vmem:[#allocation17 + $0x2b0] sm:$0xff] }
 0x2ef   :  { %2762 = vmatpush1.bf16.msra.mxu1 %v4075_v29  ;;  %2793 = vmatprep.mubr.bf16.mxu1 %v5124_v56  ;;  %v1269_v29 = vld [vmem:[#allocation17 + $0x7d0] sm:$0xff] }
 0x2f0   :  { %2803 = vmatpush1.bf16.msra.mxu0 %v4203_v30  ;;  %2834 = vmatprep.mubr.bf16.mxu0 %v5126_v27  ;;  %v1273_v30 = vld [vmem:[#allocation17 + $0x7f0] sm:$0xff] }
 0x2f1   :  { %2763 = vmatprep.subr.bf16.mxu1 %v4068_v9  ;;  %2804 = vmatprep.subr.bf16.mxu0 %v4196_v11  ;;  %v4019_v9 = vcombine.low %v1021_v1, %v1025_v2  ;;  %v4147_v11 = vcombine.low %v1149_v3, %v1153_v4  ;;  %v4268_v13 = vcombine.high %v1269_v29, %v1273_v30  ;;  %v1093_v3 = vld [vmem:[#allocation17 + $0x250] sm:$0xff] }
 0x2f2   :  { %v4100_v1 = vcombine.high %v1101_v59, %v1105_v60  ;;  %v1097_v4 = vld [vmem:[#allocation17 + $0x270] sm:$0xff] }
 0x2f3   :  { %2764 = vmatpush1.bf16.msra.mxu1 %v4067_v16  ;;  %v1261_v16 = vld [vmem:[#allocation17 + $0x790] sm:$0xff] }
 0x2f4   :  { %2805 = vmatpush1.bf16.msra.mxu0 %v4195_v19  ;;  %2765 = vmatprep.subr.bf16.mxu1 %v4060_v20  ;;  %v1265_v19 = vld [vmem:[#allocation17 + $0x7b0] sm:$0xff]  ;;  %v4139_v20 = vcombine.low %v1141_v26, %v1145_v28  ;;  %v4092_v26 = vcombine.high %v1093_v3, %v1097_v4 }
 0x2f5   :  { %2806 = vmatprep.subr.bf16.mxu0 %v4188_v21  ;;  %v4267_v21 = vcombine.low %v1269_v29, %v1273_v30  ;;  %v4260_v31 = vcombine.high %v1261_v16, %v1265_v19  ;;  %v1085_v29 = vld [vmem:[#allocation17 + $0x210] sm:$0xff] }
 0x2f6   :  { %v1089_v30 = vld [vmem:[#allocation17 + $0x230] sm:$0xff] }
 0x2f7   :  { %2766 = vmatpush1.bf16.msra.mxu1 %v4059_v36  ;;  %v1253_v36 = vld [vmem:[#allocation17 + $0x750] sm:$0xff] }
 0x2f8   :  { %2807 = vmatpush1.bf16.msra.mxu0 %v4187_v37  ;;  %2767 = vmatprep.subr.bf16.mxu1 %v4052_v38  ;;  %v1257_v37 = vld [vmem:[#allocation17 + $0x770] sm:$0xff]  ;;  %v4131_v38 = vcombine.low %v1133_v14, %v1137_v15  ;;  %v4084_v14 = vcombine.high %v1085_v29, %v1089_v30 }
 0x2f9   :  { %2808 = vmatprep.subr.bf16.mxu0 %v4180_v39  ;;  %v4259_v39 = vcombine.low %v1261_v16, %v1265_v19  ;;  %v4252_v41 = vcombine.high %v1253_v36, %v1257_v37  ;;  %v1078_v16 = vld [vmem:[#allocation17 + $0x1d8] sm:$0xff] }
 0x2fa   :  { %v1082_v19 = vld [vmem:[#allocation17 + $0x1f8] sm:$0xff] }
 0x2fb   :  { %2768 = vmatpush1.bf16.msra.mxu1 %v4051_v44  ;;  %v1245_v44 = vld [vmem:[#allocation17 + $0x710] sm:$0xff] }
 0x2fc   :  { %2809 = vmatpush1.bf16.msra.mxu0 %v4179_v45  ;;  %2769 = vmatprep.subr.bf16.mxu1 %v4044_v46  ;;  %v1249_v45 = vld [vmem:[#allocation17 + $0x730] sm:$0xff]  ;;  %v4123_v46 = vcombine.low %v1125_v33, %v1129_v35  ;;  %v4078_v33 = vcombine.high %v1078_v16, %v1082_v19 }
 0x2fd   :  { %2810 = vmatprep.subr.bf16.mxu0 %v4172_v49  ;;  %v4251_v49 = vcombine.low %v1253_v36, %v1257_v37  ;;  %v4244_v51 = vcombine.high %v1245_v44, %v1249_v45  ;;  %v1070_v36 = vld [vmem:[#allocation17 + $0x198] sm:$0xff] }
 0x2fe   :  { %v1074_v37 = vld [vmem:[#allocation17 + $0x1b8] sm:$0xff] }
 0x2ff   :  { %2770 = vmatpush1.bf16.msra.mxu1 %v4043_v48  ;;  %v1237_v48 = vld [vmem:[#allocation17 + $0x6d0] sm:$0xff] }
 0x300   :  { %2811 = vmatpush1.bf16.msra.mxu0 %v4171_v53  ;;  %2771 = vmatprep.subr.bf16.mxu1 %v4036_v54  ;;  %v1241_v53 = vld [vmem:[#allocation17 + $0x6f0] sm:$0xff]  ;;  %v4115_v54 = vcombine.low %v1117_v42, %v1121_v43  ;;  %v4070_v42 = vcombine.high %v1070_v36, %v1074_v37  ;;  %v1062_v43 = vld [vmem:[#allocation17 + $0x158] sm:$0xff] }
 0x301   :  { %2812 = vmatprep.subr.bf16.mxu0 %v4164_v55  ;;  %v4243_v55 = vcombine.low %v1245_v44, %v1249_v45  ;;  %v4236_v58 = vcombine.high %v1237_v48, %v1241_v53  ;;  %v1066_v44 = vld [vmem:[#allocation17 + $0x178] sm:$0xff] }
 0x303   :  { %2772 = vmatpush1.bf16.msra.mxu1 %v4035_v61  ;;  %v1229_v61 = vld [vmem:[#allocation17 + $0x690] sm:$0xff] }
 0x304   :  { %2813 = vmatpush1.bf16.msra.mxu0 %v4163_v62  ;;  %2773 = vmatprep.subr.bf16.mxu1 %v4028_v63  ;;  %v1233_v62 = vld [vmem:[#allocation17 + $0x6b0] sm:$0xff]  ;;  %v4107_v63 = vcombine.low %v1109_v52, %v1113_v47  ;;  %v4062_v52 = vcombine.high %v1062_v43, %v1066_v44 }
 0x305   :  { %2814 = vmatprep.subr.bf16.mxu0 %v4156_v0  ;;  %v4235_v0 = vcombine.low %v1237_v48, %v1241_v53  ;;  %v4228_v2 = vcombine.high %v1229_v61, %v1233_v62  ;;  %v1054_v48 = vld [vmem:[#allocation17 + $0x118] sm:$0xff] }
 0x306   :  { %v1058_v53 = vld [vmem:[#allocation17 + $0x138] sm:$0xff] }
 0x307   :  { %2774 = vmatpush1.bf16.msra.mxu1 %v4027_v5  ;;  %v1221_v5 = vld [vmem:[#allocation17 + $0x650] sm:$0xff] }
 0x308   :  { %2815 = vmatpush1.bf16.msra.mxu0 %v4155_v6  ;;  %2775 = vmatprep.subr.bf16.mxu1 %v4020_v24  ;;  %v1225_v6 = vld [vmem:[#allocation17 + $0x670] sm:$0xff]  ;;  %v4099_v24 = vcombine.low %v1101_v59, %v1105_v60  ;;  %v4054_v59 = vcombine.high %v1054_v48, %v1058_v53  ;;  %v1046_v60 = vld [vmem:[#allocation17 + $0xd8] sm:$0xff] }
 0x309   :  { %2816 = vmatprep.subr.bf16.mxu0 %v4148_v25  ;;  %v4227_v25 = vcombine.low %v1229_v61, %v1233_v62  ;;  %v4220_v28 = vcombine.high %v1221_v5, %v1225_v6  ;;  %v1050_v61 = vld [vmem:[#allocation17 + $0xf8] sm:$0xff] }
 0x30a   :  { %v1174_v62 = vld [vmem:[#allocation17 + $0x4d8] sm:$0xff] }
 0x30b   :  { %2776 = vmatpush1.bf16.msra.mxu1 %v4019_v9  ;;  %v1213_v9 = vld [vmem:[#allocation17 + $0x610] sm:$0xff] }
 0x30c   :  { %2817 = vmatpush1.bf16.msra.mxu0 %v4147_v11  ;;  %2777 = vmatprep.subr.bf16.mxu1 %v4140_v12  ;;  %v1217_v11 = vld [vmem:[#allocation17 + $0x630] sm:$0xff]  ;;  %v4091_v12 = vcombine.low %v1093_v3, %v1097_v4  ;;  %v1038_v3 = vld [vmem:[#allocation17 + $0x98] sm:$0xff] }
 0x30d   :  { %2818 = vmatprep.subr.bf16.mxu0 %v4268_v13  ;;  %v4219_v13 = vcombine.low %v1221_v5, %v1225_v6  ;;  %v4212_v15 = vcombine.high %v1213_v9, %v1217_v11  ;;  %v1042_v4 = vld [vmem:[#allocation17 + $0xb8] sm:$0xff] }
 0x30e   :  { %v1166_v5 = vld [vmem:[#allocation17 + $0x498] sm:$0xff] }
 0x30f   :  { %2778 = vmatpush2.bf16.msra.mxu1 %v4139_v20  ;;  %v1206_v20 = vld [vmem:[#allocation17 + $0x5d8] sm:$0xff] }
 0x310   :  { %2819 = vmatpush2.bf16.msra.mxu0 %v4267_v21  ;;  %2779 = vmatprep.subr.bf16.mxu1 %v4132_v22  ;;  %v1210_v21 = vld [vmem:[#allocation17 + $0x5f8] sm:$0xff]  ;;  %v4083_v22 = vcombine.low %v1085_v29, %v1089_v30 }
 0x311   :  { %2820 = vmatprep.subr.bf16.mxu0 %v4260_v31  ;;  %v4211_v31 = vcombine.low %v1213_v9, %v1217_v11  ;;  %v4206_v35 = vcombine.high %v1206_v20, %v1210_v21  ;;  %v1170_v6 = vld [vmem:[#allocation17 + $0x4b8] sm:$0xff] }
 0x312   :  { %v1030_v29 = vld [vmem:[#allocation17 + $0x58] sm:$0xff] }
 0x313   :  { %2780 = vmatpush2.bf16.msra.mxu1 %v4131_v38  ;;  %v4077_v38 = vcombine.low %v1078_v16, %v1082_v19  ;;  %v1034_v30 = vld [vmem:[#allocation17 + $0x78] sm:$0xff] }
 0x314   :  { %2821 = vmatpush2.bf16.msra.mxu0 %v4259_v39  ;;  %2781 = vmatprep.subr.bf16.mxu1 %v4124_v40  ;;  %v1198_v39 = vld [vmem:[#allocation17 + $0x598] sm:$0xff] }
 0x315   :  { %2822 = vmatprep.subr.bf16.mxu0 %v4252_v41  ;;  %v1202_v40 = vld [vmem:[#allocation17 + $0x5b8] sm:$0xff]  ;;  %v4205_v41 = vcombine.low %v1206_v20, %v1210_v21 }
 0x316   :  { %v4198_v45 = vcombine.high %v1198_v39, %v1202_v40  ;;  %v1158_v9 = vld [vmem:[#allocation17 + $0x458] sm:$0xff] }
 0x317   :  { %2782 = vmatpush2.bf16.msra.mxu1 %v4123_v46  ;;  %v1190_v46 = vld [vmem:[#allocation17 + $0x558] sm:$0xff] }
 0x318   :  { %2823 = vmatpush2.bf16.msra.mxu0 %v4251_v49  ;;  %2783 = vmatprep.subr.bf16.mxu1 %v4116_v50  ;;  %v1194_v49 = vld [vmem:[#allocation17 + $0x578] sm:$0xff]  ;;  %v4069_v50 = vcombine.low %v1070_v36, %v1074_v37 }
 0x319   :  { %2824 = vmatprep.subr.bf16.mxu0 %v4244_v51  ;;  %v4197_v51 = vcombine.low %v1198_v39, %v1202_v40  ;;  %v4190_v47 = vcombine.high %v1190_v46, %v1194_v49  ;;  %v1162_v11 = vld [vmem:[#allocation17 + $0x478] sm:$0xff] }
 0x31a   :  { %v1022_v16 = vld [vmem:[#allocation17 + $0x18] sm:$0xff] }
 0x31b   :  { %2784 = vmatpush2.bf16.msra.mxu1 %v4115_v54  ;;  %v1182_v54 = vld [vmem:[#allocation17 + $0x518] sm:$0xff] }
 0x31c   :  { %2825 = vmatpush2.bf16.msra.mxu0 %v4243_v55  ;;  %2785 = vmatprep.subr.bf16.mxu1 %v4108_v18  ;;  %v1186_v55 = vld [vmem:[#allocation17 + $0x538] sm:$0xff]  ;;  %v4061_v18 = vcombine.low %v1062_v43, %v1066_v44 }
 0x31d   :  { %2826 = vmatprep.subr.bf16.mxu0 %v4236_v58  ;;  %v4189_v58 = vcombine.low %v1190_v46, %v1194_v49  ;;  %v1026_v19 = vld [vmem:[#allocation17 + $0x38] sm:$0xff] }
 0x31e   :  { %v1150_v20 = vld [vmem:[#allocation17 + $0x418] sm:$0xff]  ;;  %v4021_v40 = vcombine.low %v1022_v16, %v1026_v19 }
 0x31f   :  { %2786 = vmatpush2.bf16.msra.mxu1 %v4107_v63  ;;  %v1178_v63 = vld [vmem:[#allocation17 + $0x4f8] sm:$0xff] }
 0x320   :  { %2827 = vmatpush2.bf16.msra.mxu0 %v4235_v0  ;;  %2787 = vmatprep.subr.bf16.mxu1 %v4100_v1  ;;  %v4181_v0 = vcombine.low %v1182_v54, %v1186_v55  ;;  %v4046_v1 = vcombine.high %v1046_v60, %v1050_v61  ;;  %v1154_v21 = vld [vmem:[#allocation17 + $0x438] sm:$0xff] }
 0x321   :  { %2828 = vmatprep.subr.bf16.mxu0 %v4228_v2  ;;  %v4174_v2 = vcombine.high %v1174_v62, %v1178_v63  ;;  %v1142_v36 = vld [vmem:[#allocation17 + $0x3d8] sm:$0xff] }
 0x322   :  { %v1146_v37 = vld [vmem:[#allocation17 + $0x3f8] sm:$0xff] }
 0x323   :  { %2788 = vmatpush2.bf16.msra.mxu1 %v4099_v24  ;;  %v4045_v24 = vcombine.low %v1046_v60, %v1050_v61  ;;  %v1274_v39 = vld [vmem:[#allocation17 + $0x7f8] sm:$0xff] }
 0x324   :  { %2829 = vmatpush2.bf16.msra.mxu0 %v4227_v25  ;;  %2789 = vmatprep.subr.bf16.mxu1 %v4092_v26  ;;  %v4173_v25 = vcombine.low %v1174_v62, %v1178_v63  ;;  %v4038_v26 = vcombine.high %v1038_v3, %v1042_v4  ;;  %v1134_v44 = vld [vmem:[#allocation17 + $0x398] sm:$0xff] }
 0x325   :  { %2830 = vmatprep.subr.bf16.mxu0 %v4220_v28  ;;  %v4166_v28 = vcombine.high %v1166_v5, %v1170_v6  ;;  %v1262_v46 = vld [vmem:[#allocation17 + $0x798] sm:$0xff] }
 0x326   :  { %v1266_v49 = vld [vmem:[#allocation17 + $0x7b8] sm:$0xff] }
 0x327   :  { %2790 = vmatpush2.bf16.msra.mxu1 %v4091_v12  ;;  %v4037_v12 = vcombine.low %v1038_v3, %v1042_v4  ;;  %v1118_v60 = vld [vmem:[#allocation17 + $0x318] sm:$0xff] }
 0x328   :  { %2831 = vmatpush2.bf16.msra.mxu0 %v4219_v13  ;;  %2791 = vmatprep.subr.bf16.mxu1 %v4084_v14  ;;  %v4165_v13 = vcombine.low %v1166_v5, %v1170_v6  ;;  %v4030_v14 = vcombine.high %v1030_v29, %v1034_v30  ;;  %v1122_v61 = vld [vmem:[#allocation17 + $0x338] sm:$0xff] }
 0x329   :  { %2832 = vmatprep.subr.bf16.mxu0 %v4212_v15  ;;  %v4158_v15 = vcombine.high %v1158_v9, %v1162_v11  ;;  %v1246_v62 = vld [vmem:[#allocation17 + $0x718] sm:$0xff] }
 0x32a   :  { %v1250_v63 = vld [vmem:[#allocation17 + $0x738] sm:$0xff] }
 0x32b   :  { %2792 = vmatpush2.bf16.msra.mxu1 %v4083_v22  ;;  %v4029_v22 = vcombine.low %v1030_v29, %v1034_v30  ;;  %v1110_v3 = vld [vmem:[#allocation17 + $0x2d8] sm:$0xff] }
 0x32c   :  { %2833 = vmatpush2.bf16.msra.mxu0 %v4211_v31  ;;  %2843 = vmatprep.subr.bf16.mxu1 %v4078_v33  ;;  %v4157_v31 = vcombine.low %v1158_v9, %v1162_v11  ;;  %v4022_v33 = vcombine.high %v1022_v16, %v1026_v19  ;;  %v1114_v4 = vld [vmem:[#allocation17 + $0x2f8] sm:$0xff] }
 0x32d   :  { %2884 = vmatprep.subr.bf16.mxu0 %v4206_v35  ;;  %v4150_v35 = vcombine.high %v1150_v20, %v1154_v21  ;;  %v1238_v5 = vld [vmem:[#allocation17 + $0x6d8] sm:$0xff] }
 0x32e   :  { %2794 = vmatmul.mubr.bf16.vlgmr.msra.gmra.mxu1 %v5128_v23  ;;  %v1242_v6 = vld [vmem:[#allocation17 + $0x6f8] sm:$0xff] }
 0x32f   :  { %2835 = vmatmul.mubr.bf16.vlgmr.msra.gmra.mxu0 %v5130_v17  ;;  %2844 = vmatpush1.bf16.msra.mxu1 %v4077_v38  ;;  %v1270_v38 = vld [vmem:[#allocation17 + $0x7d8] sm:$0xff] }
 0x330   :  { %2875 = vmatprep.mubr.bf16.mxu1 %v5124_v56  ;;  %2885 = vmatpush1.bf16.msra.mxu0 %v4205_v41  ;;  %v4182_v56 = vcombine.high %v1182_v54, %v1186_v55  ;;  %v4149_v41 = vcombine.low %v1150_v20, %v1154_v21  ;;  %v4270_v43 = vcombine.high %v1270_v38, %v1274_v39  ;;  %v1254_v54 = vld [vmem:[#allocation17 + $0x758] sm:$0xff] }
 0x331   :  { %2916 = vmatprep.mubr.bf16.mxu0 %v5126_v27  ;;  %2845 = vmatprep.subr.bf16.mxu1 %v4070_v42  ;;  %v4053_v27 = vcombine.low %v1054_v48, %v1058_v53  ;;  %v4142_v42 = vcombine.high %v1142_v36, %v1146_v37  ;;  %v1126_v48 = vld [vmem:[#allocation17 + $0x358] sm:$0xff] }
 0x332   :  { %2886 = vmatprep.subr.bf16.mxu0 %v4198_v45  ;;  %v1138_v45 = vld [vmem:[#allocation17 + $0x3b8] sm:$0xff] }
 0x333   :  { %2846 = vmatpush1.bf16.msra.mxu1 %v4069_v50  ;;  %v4141_v50 = vcombine.low %v1142_v36, %v1146_v37  ;;  %v1130_v53 = vld [vmem:[#allocation17 + $0x378] sm:$0xff] }
 0x334   :  { %2887 = vmatpush1.bf16.msra.mxu0 %v4197_v51  ;;  %2847 = vmatprep.subr.bf16.mxu1 %v4062_v52  ;;  %v4269_v51 = vcombine.low %v1270_v38, %v1274_v39  ;;  %v4134_v52 = vcombine.high %v1134_v44, %v1138_v45  ;;  %v1258_v55 = vld [vmem:[#allocation17 + $0x778] sm:$0xff] }
 0x335   :  { %2888 = vmatprep.subr.bf16.mxu0 %v4190_v47  ;;  %v4262_v47 = vcombine.high %v1262_v46, %v1266_v49  ;;  %v1102_v29 = vld [vmem:[#allocation17 + $0x298] sm:$0xff] }
 0x336   :  { %v1106_v30 = vld [vmem:[#allocation17 + $0x2b8] sm:$0xff] }
 0x337   :  { %2848 = vmatpush1.bf16.msra.mxu1 %v4061_v18  ;;  %v4133_v18 = vcombine.low %v1134_v44, %v1138_v45  ;;  %v1230_v9 = vld [vmem:[#allocation17 + $0x698] sm:$0xff] }
 0x338   :  { %2889 = vmatpush1.bf16.msra.mxu0 %v4189_v58  ;;  %2849 = vmatprep.subr.bf16.mxu1 %v4054_v59  ;;  %v4261_v58 = vcombine.low %v1262_v46, %v1266_v49  ;;  %v4126_v59 = vcombine.high %v1126_v48, %v1130_v53  ;;  %v1234_v11 = vld [vmem:[#allocation17 + $0x6b8] sm:$0xff] }
 0x339   :  { %2890 = vmatprep.subr.bf16.mxu0 %v4182_v56  ;;  %v4254_v56 = vcombine.high %v1254_v54, %v1258_v55  ;;  %v1094_v16 = vld [vmem:[#allocation17 + $0x258] sm:$0xff] }
 0x33a   :  { %v1098_v19 = vld [vmem:[#allocation17 + $0x278] sm:$0xff] }
 0x33b   :  { %2850 = vmatpush1.bf16.msra.mxu1 %v4053_v27  ;;  %v4125_v27 = vcombine.low %v1126_v48, %v1130_v53  ;;  %v1222_v20 = vld [vmem:[#allocation17 + $0x658] sm:$0xff] }
 0x33c   :  { %2891 = vmatpush1.bf16.msra.mxu0 %v4181_v0  ;;  %2851 = vmatprep.subr.bf16.mxu1 %v4046_v1  ;;  %v4253_v0 = vcombine.low %v1254_v54, %v1258_v55  ;;  %v4118_v1 = vcombine.high %v1118_v60, %v1122_v61  ;;  %v1226_v21 = vld [vmem:[#allocation17 + $0x678] sm:$0xff] }
 0x33d   :  { %2892 = vmatprep.subr.bf16.mxu0 %v4174_v2  ;;  %v4246_v2 = vcombine.high %v1246_v62, %v1250_v63  ;;  %v1086_v36 = vld [vmem:[#allocation17 + $0x218] sm:$0xff] }
 0x33e   :  { %v1090_v37 = vld [vmem:[#allocation17 + $0x238] sm:$0xff] }
 0x33f   :  { %2852 = vmatpush1.bf16.msra.mxu1 %v4045_v24  ;;  %v4117_v24 = vcombine.low %v1118_v60, %v1122_v61  ;;  %v1214_v38 = vld [vmem:[#allocation17 + $0x618] sm:$0xff]  ;;  %v4085_v44 = vcombine.low %v1086_v36, %v1090_v37 }
 0x340   :  { %2893 = vmatpush1.bf16.msra.mxu0 %v4173_v25  ;;  %2853 = vmatprep.subr.bf16.mxu1 %v4038_v26  ;;  %v4245_v25 = vcombine.low %v1246_v62, %v1250_v63  ;;  %v4110_v26 = vcombine.high %v1110_v3, %v1114_v4  ;;  %v1218_v39 = vld [vmem:[#allocation17 + $0x638] sm:$0xff] }
 0x341   :  { %2894 = vmatprep.subr.bf16.mxu0 %v4166_v28  ;;  %v4238_v28 = vcombine.high %v1238_v5, %v1242_v6  ;;  %v4213_v45 = vcombine.low %v1214_v38, %v1218_v39  ;;  %v5155_v46 = vld [vmem:[%s5304_s10] sm:$0xff] }
 0x342   :  { %v1280_v49 = vrot.slane %v5155_v46, %v5061_v8 }
 0x343   :  { %2854 = vmatpush1.bf16.msra.mxu1 %v4037_v12  ;;  %v4109_v12 = vcombine.low %v1110_v3, %v1114_v4 }
 0x344   :  { %2895 = vmatpush1.bf16.msra.mxu0 %v4165_v13  ;;  %2855 = vmatprep.subr.bf16.mxu1 %v4030_v14  ;;  %v4237_v13 = vcombine.low %v1238_v5, %v1242_v6  ;;  %v4102_v14 = vcombine.high %v1102_v29, %v1106_v30 }
 0x345   :  { %2896 = vmatprep.subr.bf16.mxu0 %v4158_v15  ;;  %v4230_v15 = vcombine.high %v1230_v9, %v1234_v11 }
 0x347   :  { %2856 = vmatpush1.bf16.msra.mxu1 %v4029_v22  ;;  %v4101_v22 = vcombine.low %v1102_v29, %v1106_v30 }
 0x348   :  { %2897 = vmatpush1.bf16.msra.mxu0 %v4157_v31  ;;  %2857 = vmatprep.subr.bf16.mxu1 %v4022_v33  ;;  %v4229_v31 = vcombine.low %v1230_v9, %v1234_v11  ;;  %v4094_v33 = vcombine.high %v1094_v16, %v1098_v19 }
 0x349   :  { %2898 = vmatprep.subr.bf16.mxu0 %v4150_v35  ;;  %v4222_v35 = vcombine.high %v1222_v20, %v1226_v21 }
 0x34b   :  { %2858 = vmatpush1.bf16.msra.mxu1 %v4021_v40  ;;  %v4093_v40 = vcombine.low %v1094_v16, %v1098_v19 }
 0x34c   :  { %2899 = vmatpush1.bf16.msra.mxu0 %v4149_v41  ;;  %2859 = vmatprep.subr.bf16.mxu1 %v4142_v42  ;;  %v4221_v41 = vcombine.low %v1222_v20, %v1226_v21  ;;  %v4086_v42 = vcombine.high %v1086_v36, %v1090_v37 }
 0x34d   :  { %2900 = vmatprep.subr.bf16.mxu0 %v4270_v43  ;;  %v4214_v43 = vcombine.high %v1214_v38, %v1218_v39 }
 0x34f   :  { %2860 = vmatpush2.bf16.msra.mxu1 %v4141_v50  ;;  %v1284_v50 = vrot.slane %v5155_v46, %v5064_v10 }
 0x350   :  { %2901 = vmatpush2.bf16.msra.mxu0 %v4269_v51  ;;  %2861 = vmatprep.subr.bf16.mxu1 %v4134_v52 }
 0x351   :  { %2902 = vmatprep.subr.bf16.mxu0 %v4262_v47 }
 0x353   :  { %2862 = vmatpush2.bf16.msra.mxu1 %v4133_v18 }
 0x354   :  { %2903 = vmatpush2.bf16.msra.mxu0 %v4261_v58  ;;  %2863 = vmatprep.subr.bf16.mxu1 %v4126_v59 }
 0x355   :  { %2904 = vmatprep.subr.bf16.mxu0 %v4254_v56 }
 0x357   :  { %2864 = vmatpush2.bf16.msra.mxu1 %v4125_v27 }
 0x358   :  { %2905 = vmatpush2.bf16.msra.mxu0 %v4253_v0  ;;  %2865 = vmatprep.subr.bf16.mxu1 %v4118_v1 }
 0x359   :  { %2906 = vmatprep.subr.bf16.mxu0 %v4246_v2 }
 0x35b   :  { %2866 = vmatpush2.bf16.msra.mxu1 %v4117_v24 }
 0x35c   :  { %2907 = vmatpush2.bf16.msra.mxu0 %v4245_v25  ;;  %2867 = vmatprep.subr.bf16.mxu1 %v4110_v26 }
 0x35d   :  { %2908 = vmatprep.subr.bf16.mxu0 %v4238_v28 }
 0x35f   :  { %2868 = vmatpush2.bf16.msra.mxu1 %v4109_v12 }
 0x360   :  { %2909 = vmatpush2.bf16.msra.mxu0 %v4237_v13  ;;  %2869 = vmatprep.subr.bf16.mxu1 %v4102_v14 }
 0x361   :  { %2910 = vmatprep.subr.bf16.mxu0 %v4230_v15 }
 0x363   :  { %2870 = vmatpush2.bf16.msra.mxu1 %v4101_v22 }
 0x364   :  { %2911 = vmatpush2.bf16.msra.mxu0 %v4229_v31  ;;  %2871 = vmatprep.subr.bf16.mxu1 %v4094_v33 }
 0x365   :  { %2912 = vmatprep.subr.bf16.mxu0 %v4222_v35 }
 0x367   :  { %2872 = vmatpush2.bf16.msra.mxu1 %v4093_v40  ;;  %v1288_v40 = vrot.slane %v5155_v46, %v5094_v32 }
 0x368   :  { %2913 = vmatpush2.bf16.msra.mxu0 %v4221_v41  ;;  %2873 = vmatprep.subr.bf16.mxu1 %v4086_v42  ;;  %v1292_v41 = vrot.slane %v5155_v46, %v5097_v34 }
 0x369   :  { %2914 = vmatprep.subr.bf16.mxu0 %v4214_v43 }
 0x36b   :  { %2874 = vmatpush2.bf16.msra.mxu1 %v4085_v44 }
 0x36c   :  { %2915 = vmatpush2.bf16.msra.mxu0 %v4213_v45 }
 0x36e   :  { %2876 = vmatmul.mubr.bf16.vlgmr.msra.gmra.mxu1 %v5128_v23  ;;  %v2631_v51 = vpop.f32.mrf.mxu1  ;;  %v2672_v52 = vpop.f32.mrf.mxu0 }
 0x36f   :  { %2917 = vmatmul.mubr.bf16.vlgmr.msra.gmra.mxu0 %v5130_v17  ;;  %v2632_v47 = vadd.f32 %v2631_v51, %v1280_v49 }
 0x370   :  { %v2633_v48 = vpop.f32.mrf.mxu1  ;;  %v2674_v53 = vpop.f32.mrf.mxu0 }
 0x371   :  { %v2673_v54 = vadd.f32 %v2672_v52, %v2632_v47  ;;  %v2634_v55 = vadd.f32 %v2633_v48, %v1284_v50 }
 0x372   :  { %v2635_v18 = vpop.f32.mrf.mxu1  ;;  %v2676_v58 = vpop.f32.mrf.mxu0 }
 0x373   :  { %v2927_v59 = vrot.slane %v2673_v54, 4  ;;  %v2675_v56 = vadd.f32 %v2674_v53, %v2634_v55 }
 0x374   :  { %v2636_v60 = vpop.f32.mrf.mxu1  ;;  %v2677_v61 = vpop.f32.mrf.mxu0 }
 0x375   :  { %v2928_v62 = vadd.f32 %v2927_v59, %v2673_v54  ;;  %v2933_v63 = vrot.slane %v2675_v56, 4 }
 0x377   :  { %v2929_v27 = vrot.slane %v2928_v62, 2  ;;  %v2934_v0 = vadd.f32 %v2933_v63, %v2675_v56 }
 0x379   :  { %v2930_v23 = vadd.f32 %v2929_v27, %v2928_v62  ;;  %v2935_v1 = vrot.slane %v2934_v0, 2 }
 0x37b   :  { %v2931_v2 = vrot.slane %v2930_v23, 1  ;;  %v2936_v3 = vadd.f32 %v2935_v1, %v2934_v0 }
 0x37d   :  { %v2932_v17 = vadd.f32 %v2931_v2, %v2930_v23  ;;  %v2937_v4 = vrot.slane %v2936_v3, 1 }
 0x37f   :  { %v2975_v5 = vmul.f32 0.125, %v2932_v17  ;;  %v2938_v6 = vadd.f32 %v2937_v4, %v2936_v3 }
 0x381   :  { %v5163_v24 = vsub.f32 %v2673_v54, %v2975_v5  ;;  %v2976_v25 = vmul.f32 0.125, %v2938_v6 }
 0x383   :  { %v2991_v26 = vmul.f32 %v5163_v24, %v5163_v24  ;;  %v5167_v28 = vsub.f32 %v2675_v56, %v2976_v25 }
 0x385   :  { %v2999_v29 = vrot.slane %v2991_v26, 4  ;;  %v2992_v30 = vmul.f32 %v5167_v28, %v5167_v28 }
 0x387   :  { %v3000_v9 = vadd.f32 %v2999_v29, %v2991_v26  ;;  %v3005_v11 = vrot.slane %v2992_v30, 4 }
 0x389   :  { %v3001_v12 = vrot.slane %v3000_v9, 2  ;;  %v3006_v13 = vadd.f32 %v3005_v11, %v2992_v30 }
 0x38b   :  { %v3002_v14 = vadd.f32 %v3001_v12, %v3000_v9  ;;  %v3007_v15 = vrot.slane %v3006_v13, 2 }
 0x38d   :  { %v3003_v16 = vrot.slane %v3002_v14, 1  ;;  %v3008_v19 = vadd.f32 %v3007_v15, %v3006_v13 }
 0x38f   :  { %v3004_v20 = vadd.f32 %v3003_v16, %v3002_v14  ;;  %v3009_v21 = vrot.slane %v3008_v19, 1 }
 0x391   :  { %v3047_v22 = vmul.f32 0.125, %v3004_v20  ;;  %v3010_v31 = vadd.f32 %v3009_v21, %v3008_v19 }
 0x393   :  { %v3055_v33 = vadd.f32 1e-05, %v3047_v22  ;;  %v3048_v35 = vmul.f32 0.125, %v3010_v31  ;;  %v4549_v31 = vld [vmem:[#allocation20 + $0x78] sm:$0xff]  }
 0x394   :  { %4336 = vmatprep.subr.bf16.mxu1 %v4549_v31  ;;  %v4580_v31 = vld [vmem:[#allocation20 + $0x80] sm:$0xff]  }
 0x395   :  { %v3056_v36 = vadd.f32 1e-05, %v3048_v35  ;;  %4625 = vrsqrt.f32 %v3055_v33  ;;  %v4550_v33 = vld [vmem:[#allocation20 + $0xf8] sm:$0xff]  }
 0x396   :  { %v4551_v35 = vld [vmem:[#allocation20 + $0x38] sm:$0xff]   ;;  %4358 = vmatprep.subr.bf16.mxu0 %v4550_v33 }
 0x397   :  { %4627 = vrsqrt.f32 %v3056_v36  ;;  %v4552_v36 = vld [vmem:[#allocation20 + $0xb8] sm:$0xff]   ;;  %4337 = vmatpush3.bf16.msra.mxu1 %v4551_v35 }
 0x398   :  { %4359 = vmatpush3.bf16.msra.mxu0 %v4552_v36  ;;  %v4581_v33 = vld [vmem:[#allocation20 + $0x178] sm:$0xff]  }
 0x399   :  { %v4582_v35 = vld [vmem:[#allocation20 + $0x1f8] sm:$0xff]  }
 0x3a2   :  { %v5171_v37 = vpop.eup %4625 }
 0x3a4   :  { %v5173_v38 = vpop.eup %4627 }
 0x3a5   :  { %v3079_v39 = vcombine.low %v5171_v37, %v5173_v38  ;;  %v4565_v38 = vld [vmem:[#allocation20 + $0x58] sm:$0xff]  }
 0x3ae   :  { %v2713_v42 = vpop.f32.mrf.mxu1  ;;  %v2754_v43 = vpop.f32.mrf.mxu0 }
 0x3af   :  { %v2714_v44 = vadd.f32 %v2713_v42, %v1288_v40  ;;  %v4553_v40 = vld [vmem:[#allocation20 + $0x70] sm:$0xff]  }
 0x3b0   :  { %v2715_v45 = vpop.f32.mrf.mxu1  ;;  %v2756_v49 = vpop.f32.mrf.mxu0  ;;  %v4555_v42 = vld [vmem:[#allocation20 + $0x30] sm:$0xff]   ;;  %4338 = vmatprep.subr.bf16.mxu1 %v4553_v40 }
 0x3b1   :  { %v2755_v50 = vadd.f32 %v2754_v43, %v2714_v44  ;;  %v2716_v51 = vadd.f32 %v2715_v45, %v1292_v41  ;;  %v4554_v41 = vld [vmem:[#allocation20 + $0xf0] sm:$0xff]   ;;  %4339 = vmatpush3.bf16.msra.mxu1 %v4555_v42  ;;  %v4557_v45 = vld [vmem:[#allocation20 + $0x68] sm:$0xff]  }
 0x3b2   :  { %v2717_v52 = vpop.f32.mrf.mxu1  ;;  %v2758_v47 = vpop.f32.mrf.mxu0  ;;  %v4556_v43 = vld [vmem:[#allocation20 + $0xb0] sm:$0xff]   ;;  %4360 = vmatprep.subr.bf16.mxu0 %v4554_v41  ;;  %4340 = vmatprep.subr.bf16.mxu1 %v4557_v45 }
 0x3b3   :  { %v2939_v48 = vrot.slane %v2755_v50, 4  ;;  %v2757_v53 = vadd.f32 %v2756_v49, %v2716_v51  ;;  %4361 = vmatpush3.bf16.msra.mxu0 %v4556_v43  ;;  %v4558_v49 = vld [vmem:[#allocation20 + $0xe8] sm:$0xff]  }
 0x3b4   :  { %v2718_v54 = vpop.f32.mrf.mxu1  ;;  %v2759_v55 = vpop.f32.mrf.mxu0  ;;  %v4559_v51 = vld [vmem:[#allocation20 + $0x28] sm:$0xff]   ;;  %4362 = vmatprep.subr.bf16.mxu0 %v4558_v49 }
 0x3b5   :  { %v2940_v18 = vadd.f32 %v2939_v48, %v2755_v50  ;;  %v2945_v58 = vrot.slane %v2757_v53, 4  ;;  %v4560_v52 = vld [vmem:[#allocation20 + $0xa8] sm:$0xff]   ;;  %4341 = vmatpush3.bf16.msra.mxu1 %v4559_v51  ;;  %v5193_v48 = vrot.slane %v3079_v39, %v5069_v57  ;;  %v5199_v54 = vsub.s32 4, %v5058_v7  ;;  %v4561_v55 = vld [vmem:[#allocation20 + $0x60] sm:$0xff]   ;;  %v4566_v39 = vld [vmem:[#allocation20 + $0xd8] sm:$0xff]  }
 0x3b6   :  { %4342 = vmatprep.subr.bf16.mxu1 %v4561_v55 }
 0x3b7   :  { %v2941_v59 = vrot.slane %v2940_v18, 2  ;;  %v2946_v56 = vadd.f32 %v2945_v58, %v2757_v53  ;;  %4363 = vmatpush3.bf16.msra.mxu0 %v4560_v52  ;;  %v4563_v58 = vld [vmem:[#allocation20 + $0x20] sm:$0xff]   ;;  %v1296_v37 = vrot.slane %v5155_v46, %v5199_v54 }
 0x3b9   :  { %v2942_v60 = vadd.f32 %v2941_v59, %v2940_v18  ;;  %v2947_v61 = vrot.slane %v2946_v56, 2  ;;  %v4562_v18 = vld [vmem:[#allocation20 + $0xe0] sm:$0xff]   ;;  %4343 = vmatpush3.bf16.msra.mxu1 %v4563_v58 }
 0x3ba   :  { %v4564_v59 = vld [vmem:[#allocation20 + $0xa0] sm:$0xff]   ;;  %4364 = vmatprep.subr.bf16.mxu0 %v4562_v18  ;;  %4344 = vmatprep.subr.bf16.mxu1 %v4565_v38  ;;  %v5211_v18 = vsub.s32 6, %v5058_v7 }
 0x3bb   :  { %v2943_v62 = vrot.slane %v2942_v60, 1  ;;  %v2948_v63 = vadd.f32 %v2947_v61, %v2946_v56  ;;  %4365 = vmatpush3.bf16.msra.mxu0 %v4564_v59  ;;  %v4567_v61 = vld [vmem:[#allocation20 + $0x18] sm:$0xff]   ;;  %v5214_v59 = vsub.s32 7, %v5058_v7 }
 0x3bc   :  { %4366 = vmatprep.subr.bf16.mxu0 %v4566_v39  ;;  %v1304_v38 = vrot.slane %v5155_v46, %v5211_v18 }
 0x3bd   :  { %v2944_v27 = vadd.f32 %v2943_v62, %v2942_v60  ;;  %v2949_v0 = vrot.slane %v2948_v63, 1  ;;  %v5204_v60 = vsub.s32 5, %v5058_v7  ;;  %v4568_v62 = vld [vmem:[#allocation20 + $0x98] sm:$0xff]   ;;  %4345 = vmatpush3.bf16.msra.mxu1 %v4567_v61  ;;  %v1308_v61 = vrot.slane %v5155_v46, %v5214_v59 }
 0x3bf   :  { %v2977_v23 = vmul.f32 0.125, %v2944_v27  ;;  %v2950_v1 = vadd.f32 %v2949_v0, %v2948_v63  ;;  %v1300_v63 = vrot.slane %v5155_v46, %v5204_v60  ;;  %4367 = vmatpush3.bf16.msra.mxu0 %v4568_v62 }
 0x3c1   :  { %v5181_v2 = vsub.f32 %v2755_v50, %v2977_v23  ;;  %v2978_v3 = vmul.f32 0.125, %v2950_v1  ;;  %v4569_v1 = vld [vmem:[#allocation20 + $0x50] sm:$0xff]  }
 0x3c2   :  { %4346 = vmatprep.subr.bf16.mxu1 %v4569_v1 }
 0x3c3   :  { %v2993_v17 = vmul.f32 %v5181_v2, %v5181_v2  ;;  %v5185_v4 = vsub.f32 %v2757_v53, %v2978_v3  ;;  %v4570_v3 = vld [vmem:[#allocation20 + $0xd0] sm:$0xff]  }
 0x3c4   :  { %4368 = vmatprep.subr.bf16.mxu0 %v4570_v3 }
 0x3c5   :  { %v3011_v5 = vrot.slane %v2993_v17, 4  ;;  %v2994_v6 = vmul.f32 %v5185_v4, %v5185_v4 }
 0x3c7   :  { %v3012_v25 = vadd.f32 %v3011_v5, %v2993_v17  ;;  %v3017_v26 = vrot.slane %v2994_v6, 4  ;;  %v4571_v17 = vld [vmem:[#allocation20 + $0x10] sm:$0xff]  }
 0x3c8   :  { %4347 = vmatpush3.bf16.msra.mxu1 %v4571_v17 }
 0x3c9   :  { %v3013_v29 = vrot.slane %v3012_v25, 2  ;;  %v3018_v30 = vadd.f32 %v3017_v26, %v2994_v6  ;;  %v4572_v6 = vld [vmem:[#allocation20 + $0x90] sm:$0xff]   ;;  %v4574_v26 = vld [vmem:[#allocation20 + $0xc8] sm:$0xff]  }
 0x3ca   :  { %4369 = vmatpush3.bf16.msra.mxu0 %v4572_v6 }
 0x3cb   :  { %v3014_v9 = vadd.f32 %v3013_v29, %v3012_v25  ;;  %v3019_v11 = vrot.slane %v3018_v30, 2  ;;  %v4573_v25 = vld [vmem:[#allocation20 + $0x48] sm:$0xff]   ;;  %4370 = vmatprep.subr.bf16.mxu0 %v4574_v26 }
 0x3cc   :  { %4348 = vmatprep.subr.bf16.mxu1 %v4573_v25 }
 0x3cd   :  { %v3015_v12 = vrot.slane %v3014_v9, 1  ;;  %v3020_v13 = vadd.f32 %v3019_v11, %v3018_v30 }
 0x3cf   :  { %v3016_v14 = vadd.f32 %v3015_v12, %v3014_v9  ;;  %v3021_v15 = vrot.slane %v3020_v13, 1  ;;  %v4575_v12 = vld [vmem:[#allocation20 + $0x8] sm:$0xff]  }
 0x3d0   :  { %4349 = vmatpush3.bf16.msra.mxu1 %v4575_v12 }
 0x3d1   :  { %v3049_v16 = vmul.f32 0.125, %v3016_v14  ;;  %v3022_v19 = vadd.f32 %v3021_v15, %v3020_v13  ;;  %v4576_v13 = vld [vmem:[#allocation20 + $0x88] sm:$0xff]  }
 0x3d2   :  { %4371 = vmatpush3.bf16.msra.mxu0 %v4576_v13 }
 0x3d3   :  { %v3057_v20 = vadd.f32 1e-05, %v3049_v16  ;;  %v3050_v21 = vmul.f32 0.125, %v3022_v19  ;;  %v4577_v16 = vld [vmem:[#allocation20 + $0x40] sm:$0xff]  }
 0x3d4   :  { %v4578_v19 = vld [vmem:[#allocation20 + $0xc0] sm:$0xff]   ;;  %4350 = vmatprep.subr.bf16.mxu1 %v4577_v16 }
 0x3d5   :  { %v3058_v22 = vadd.f32 1e-05, %v3050_v21  ;;  %4629 = vrsqrt.f32 %v3057_v20  ;;  %4372 = vmatprep.subr.bf16.mxu0 %v4578_v19 }
 0x3d6   :  { %4373 = vmatpush3.bf16.msra.mxu0 %v4580_v31 }
 0x3d7   :  { %4631 = vrsqrt.f32 %v3058_v22  ;;  %v4579_v22 = vld [vmem:[#allocation20] sm:$0xff]   ;;  %4402 = vmatprep.subr.bf16.mxu0 %v4582_v35 }
 0x3d8   :  { %4351 = vmatpush3.bf16.msra.mxu1 %v4579_v22 }
 0x3d9   :  { %4380 = vmatprep.subr.bf16.mxu1 %v4581_v33 }
 0x3e2   :  { %v4630_v44 = vpop.eup %4629 }
 0x3e4   :  { %v4632_v50 = vpop.eup %4631 }
 0x3e5   :  { %v3080_v47 = vcombine.low %v4630_v44, %v4632_v50 }
 0x3e7   :  { %v5196_v53 = vrot.slane %v3080_v47, %v5069_v57 }
 0x3e9   :  { %v3111_v56 = vcombine.low %v5193_v48, %v5196_v53 }
 0x3ee   :  { %v2795_v27 = vpop.f32.mrf.mxu1 }
 0x3ef   :  { %v2796_v0 = vadd.f32 %v2795_v27, %v1296_v37  ;;  %v2836_v23 = vpop.f32.mrf.mxu0 }
 0x3f0   :  { %v2797_v5 = vpop.f32.mrf.mxu1 }
 0x3f1   :  { %v2837_v29 = vadd.f32 %v2836_v23, %v2796_v0  ;;  %v2798_v30 = vadd.f32 %v2797_v5, %v1300_v63  ;;  %v2838_v9 = vpop.f32.mrf.mxu0 }
 0x3f2   :  { %v2799_v11 = vpop.f32.mrf.mxu1 }
 0x3f3   :  { %v2839_v14 = vadd.f32 %v2838_v9, %v2798_v30  ;;  %v2840_v15 = vpop.f32.mrf.mxu0  ;;  %v2951_v40 = vrot.slane %v2837_v29, 4 }
 0x3f4   :  { %v2800_v20 = vpop.f32.mrf.mxu1 }
 0x3f5   :  { %v2841_v21 = vpop.f32.mrf.mxu0  ;;  %v2957_v36 = vrot.slane %v2839_v14, 4  ;;  %v2952_v42 = vadd.f32 %v2951_v40, %v2837_v29 }
 0x3f7   :  { %v2958_v41 = vadd.f32 %v2957_v36, %v2839_v14  ;;  %v2953_v44 = vrot.slane %v2952_v42, 2 }
 0x3f9   :  { %v2959_v43 = vrot.slane %v2958_v41, 2  ;;  %v2954_v49 = vadd.f32 %v2953_v44, %v2952_v42 }
 0x3fb   :  { %v2960_v45 = vadd.f32 %v2959_v43, %v2958_v41  ;;  %v2955_v51 = vrot.slane %v2954_v49, 1 }
 0x3fd   :  { %v2961_v50 = vrot.slane %v2960_v45, 1  ;;  %v2956_v47 = vadd.f32 %v2955_v51, %v2954_v49 }
 0x3ff   :  { %v2962_v52 = vadd.f32 %v2961_v50, %v2960_v45  ;;  %v2979_v58 = vmul.f32 0.125, %v2956_v47 }
 0x401   :  { %v2980_v55 = vmul.f32 0.125, %v2962_v52  ;;  %v5220_v39 = vsub.f32 %v2837_v29, %v2979_v58 }
 0x403   :  { %v5216_v37 = vsub.f32 %v2839_v14, %v2980_v55  ;;  %v2995_v7 = vmul.f32 %v5220_v39, %v5220_v39 }
 0x405   :  { %v2996_v63 = vmul.f32 %v5216_v37, %v5216_v37  ;;  %v3023_v46 = vrot.slane %v2995_v7, 4 }
 0x407   :  { %v3029_v6 = vrot.slane %v2996_v63, 4  ;;  %v3024_v16 = vadd.f32 %v3023_v46, %v2995_v7 }
 0x409   :  { %v3030_v13 = vadd.f32 %v3029_v6, %v2996_v63  ;;  %v3025_v33 = vrot.slane %v3024_v16, 2 }
 0x40b   :  { %v3031_v21 = vrot.slane %v3030_v13, 2  ;;  %v3026_v43 = vadd.f32 %v3025_v33, %v3024_v16 }
 0x40d   :  { %v3032_v40 = vadd.f32 %v3031_v21, %v3030_v13  ;;  %v3027_v52 = vrot.slane %v3026_v43, 1 }
 0x40f   :  { %v3033_v49 = vrot.slane %v3032_v40, 1 }
 0x411   :  { %v3034_v58 = vadd.f32 %v3033_v49, %v3032_v40 }
 0x42e   :  { %v2877_v62 = vpop.f32.mrf.mxu1 }
 0x42f   :  { %v2878_v27 = vadd.f32 %v2877_v62, %v1304_v38  ;;  %v2918_v0 = vpop.f32.mrf.mxu0  ;;  %v3028_v62 = vadd.f32 %v3027_v52, %v3026_v43 }
 0x430   :  { %v2879_v23 = vpop.f32.mrf.mxu1 }
 0x431   :  { %v2919_v1 = vadd.f32 %v2918_v0, %v2878_v27  ;;  %v2880_v3 = vadd.f32 %v2879_v23, %v1308_v61  ;;  %v2920_v17 = vpop.f32.mrf.mxu0  ;;  %v3052_v0 = vmul.f32 0.125, %v3034_v58 }
 0x432   :  { %v2881_v5 = vpop.f32.mrf.mxu1 }
 0x433   :  { %v2963_v25 = vrot.slane %v2919_v1, 4  ;;  %v2921_v26 = vadd.f32 %v2920_v17, %v2880_v3  ;;  %v2922_v29 = vpop.f32.mrf.mxu0  ;;  %v3060_v5 = vadd.f32 1e-05, %v3052_v0 }
 0x434   :  { %v2882_v30 = vpop.f32.mrf.mxu1 }
 0x435   :  { %v2964_v9 = vadd.f32 %v2963_v25, %v2919_v1  ;;  %v2969_v11 = vrot.slane %v2921_v26, 4  ;;  %v2923_v12 = vpop.f32.mrf.mxu0  ;;  %4633 = vrsqrt.f32 %v3060_v5 }
 0x437   :  { %v2965_v14 = vrot.slane %v2964_v9, 2  ;;  %v2970_v15 = vadd.f32 %v2969_v11, %v2921_v26 }
 0x439   :  { %v2966_v19 = vadd.f32 %v2965_v14, %v2964_v9  ;;  %v2971_v20 = vrot.slane %v2970_v15, 2 }
 0x43b   :  { %v2967_v22 = vrot.slane %v2966_v19, 1  ;;  %v2972_v31 = vadd.f32 %v2971_v20, %v2970_v15 }
 0x43d   :  { %v2968_v35 = vadd.f32 %v2967_v22, %v2966_v19  ;;  %v2973_v36 = vrot.slane %v2972_v31, 1 }
 0x43f   :  { %v2981_v41 = vmul.f32 0.125, %v2968_v35  ;;  %v2974_v42 = vadd.f32 %v2973_v36, %v2972_v31  ;;  %v3119_v31 = vrot.slane %v3111_v56, %v5069_v57  ;;  %v2925_v35 = vld [vmem:[%s5305_s11] sm:$0xff] }
 0x440   :  { %v5242_v36 = vld [vmem:[#allocation19] sm:$0xff] }
 0x441   :  { %v5228_v44 = vsub.f32 %v2919_v1, %v2981_v41  ;;  %v2982_v45 = vmul.f32 0.125, %v2974_v42  ;;  %v3051_v1 = vmul.f32 0.125, %v3028_v62  ;;  %v3187_v42 = vrot.slane %v5242_v36, %v5064_v10 }
 0x442   :  { %v4634_v12 = vpop.eup %4633  ;;  %v3195_v43 = vrot.slane %v5242_v36, %v5097_v34  ;;  %v3183_v48 = vrot.slane %v5242_v36, %v5061_v8  ;;  %v3203_v53 = vrot.slane %v5242_v36, %v5204_v60 }
 0x443   :  { %v2997_v50 = vmul.f32 %v5228_v44, %v5228_v44  ;;  %v2990_v51 = vsub.f32 %v2921_v26, %v2982_v45  ;;  %v3059_v29 = vadd.f32 1e-05, %v3051_v1 }
 0x445   :  { %v3035_v47 = vrot.slane %v2997_v50, 4  ;;  %v2998_v55 = vmul.f32 %v2990_v51, %v2990_v51  ;;  %4635 = vrsqrt.f32 %v3059_v29 }
 0x447   :  { %v3036_v38 = vadd.f32 %v3035_v47, %v2997_v50  ;;  %v3041_v61 = vrot.slane %v2998_v55, 4 }
 0x449   :  { %v3037_v63 = vrot.slane %v3036_v38, 2  ;;  %v3042_v27 = vadd.f32 %v3041_v61, %v2998_v55  ;;  %v3211_v55 = vrot.slane %v5242_v36, %v5214_v59 }
 0x44b   :  { %v3038_v23 = vadd.f32 %v3037_v63, %v3036_v38  ;;  %v3043_v7 = vrot.slane %v3042_v27, 2 }
 0x44d   :  { %v3039_v3 = vrot.slane %v3038_v23, 1  ;;  %v3044_v17 = vadd.f32 %v3043_v7, %v3042_v27 }
 0x44f   :  { %v3040_v6 = vadd.f32 %v3039_v3, %v3038_v23  ;;  %v3045_v25 = vrot.slane %v3044_v17, 1 }
 0x451   :  { %v3053_v26 = vmul.f32 0.125, %v3040_v6  ;;  %v3046_v30 = vadd.f32 %v3045_v25, %v3044_v17  ;;  %v4584_v6 = vld [vmem:[#allocation20 + $0x1b8] sm:$0xff]   ;;  %v4586_v25 = vld [vmem:[#allocation20 + $0x1f0] sm:$0xff]  }
 0x452   :  { %v4636_v13 = vpop.eup %4635 }
 0x453   :  { %v3061_v46 = vadd.f32 1e-05, %v3053_v26  ;;  %v3054_v9 = vmul.f32 0.125, %v3046_v30  ;;  %v3081_v15 = vcombine.low %v4636_v13, %v4634_v12  ;;  %v4587_v30 = vld [vmem:[#allocation20 + $0x130] sm:$0xff]   ;;  %v4591_v12 = vld [vmem:[#allocation20 + $0x128] sm:$0xff]  }
 0x454   :  { %v4592_v13 = vld [vmem:[#allocation20 + $0x1a8] sm:$0xff]  }
 0x455   :  { %v3062_v11 = vadd.f32 1e-05, %v3054_v9  ;;  %4637 = vrsqrt.f32 %v3061_v46  ;;  %v3103_v20 = vrot.slane %v3081_v15, %v5069_v57  ;;  %v4588_v46 = vld [vmem:[#allocation20 + $0x1b0] sm:$0xff]   ;;  %v4589_v9 = vld [vmem:[#allocation20 + $0x168] sm:$0xff]   ;;  %v4594_v15 = vld [vmem:[#allocation20 + $0x1e0] sm:$0xff]  }
 0x457   :  { %4639 = vrsqrt.f32 %v3062_v11  ;;  %v4590_v11 = vld [vmem:[#allocation20 + $0x1e8] sm:$0xff]  }
 0x462   :  { %v4638_v14 = vpop.eup %4637 }
 0x464   :  { %v4640_v16 = vpop.eup %4639 }
 0x465   :  { %v3082_v19 = vcombine.low %v4638_v14, %v4640_v16  ;;  %v4593_v14 = vld [vmem:[#allocation20 + $0x160] sm:$0xff]  }
 0x466   :  { %v4595_v16 = vld [vmem:[#allocation20 + $0x120] sm:$0xff]  }
 0x467   :  { %v3110_v21 = vrot.slane %v3082_v19, %v5069_v57  ;;  %v4596_v19 = vld [vmem:[#allocation20 + $0x1a0] sm:$0xff]  }
 0x469   :  { %v3112_v22 = vcombine.low %v3103_v20, %v3110_v21  ;;  %v4597_v20 = vld [vmem:[#allocation20 + $0x158] sm:$0xff]  }
 0x46a   :  { %v4598_v21 = vld [vmem:[#allocation20 + $0x1d8] sm:$0xff]  }
 0x46b   :  { %v3126_v33 = vrot.slane %v3112_v22, %v5069_v57  ;;  %v3191_v57 = vrot.slane %v5242_v36, %v5094_v32  ;;  %v4599_v22 = vld [vmem:[#allocation20 + $0x118] sm:$0xff]  }
 0x46d   :  { %v3127_v40 = vcombine.low %v3119_v31, %v3126_v33  ;;  %v4600_v31 = vld [vmem:[#allocation20 + $0x198] sm:$0xff]   ;;  %v4601_v33 = vld [vmem:[#allocation20 + $0x150] sm:$0xff]  }
 0x46f   :  { %v5244_v41 = vmul.f32 %v3127_v40, %v2925_v35  ;;  %v4602_v35 = vld [vmem:[#allocation20 + $0x1d0] sm:$0xff]  }
 0x471   :  { %v3138_v56 = vrot.slane %v5244_v41, %v5064_v10  ;;  %v3146_v45 = vrot.slane %v5244_v41, %v5097_v34  ;;  %v3134_v49 = vrot.slane %v5244_v41, %v5061_v8  ;;  %v3142_v50 = vrot.slane %v5244_v41, %v5094_v32 }
 0x472   :  { %v3154_v52 = vrot.slane %v5244_v41, %v5204_v60  ;;  %v3162_v47 = vrot.slane %v5244_v41, %v5214_v59  ;;  %v3158_v10 = vrot.slane %v5244_v41, %v5211_v18  ;;  %v3150_v40 = vrot.slane %v5244_v41, %v5199_v54  ;;  %v4608_v41 = vld [vmem:[#allocation20 + $0x188] sm:$0xff]  }
 0x473   :  { %v3172_v34 = vmul.f32 %v3138_v56, %v5167_v28  ;;  %v3174_v58 = vmul.f32 %v3146_v45, %v5185_v4  ;;  %v3171_v8 = vmul.f32 %v3134_v49, %v5163_v24  ;;  %v3173_v32 = vmul.f32 %v3142_v50, %v5181_v2  ;;  %v4607_v49 = vld [vmem:[#allocation20 + $0x108] sm:$0xff]   ;;  %v4609_v50 = vld [vmem:[#allocation20 + $0x140] sm:$0xff]  }
 0x474   :  { %v3176_v38 = vmul.f32 %v3154_v52, %v5216_v37  ;;  %v3178_v60 = vmul.f32 %v3162_v47, %v2990_v51  ;;  %v5278_v61 = vmul.f32 %v3158_v10, %v5228_v44  ;;  %v4583_v51 = vld [vmem:[#allocation20 + $0x138] sm:$0xff]   ;;  %v4585_v44 = vld [vmem:[#allocation20 + $0x170] sm:$0xff]   ;;  %v3199_v56 = vrot.slane %v5242_v36, %v5199_v54  ;;  %v4610_v52 = vld [vmem:[#allocation20 + $0x1c0] sm:$0xff]  }
 0x475   :  { %v3221_v62 = vadd.f32 %v3187_v42, %v3172_v34  ;;  %v3223_v63 = vadd.f32 %v3195_v43, %v3174_v58  ;;  %v3220_v59 = vadd.f32 %v3183_v48, %v3171_v8  ;;  %v3222_v27 = vadd.f32 %v3191_v57, %v3173_v32  ;;  %v4603_v42 = vld [vmem:[#allocation20 + $0x110] sm:$0xff]   ;;  %v4605_v48 = vld [vmem:[#allocation20 + $0x148] sm:$0xff]   ;;  %v4612_v10 = vld [vmem:[#allocation20 + $0x180] sm:$0xff]  }
 0x476   :  { %v3225_v0 = vadd.f32 %v3203_v53, %v3176_v38  ;;  %v3227_v23 = vadd.f32 %v3211_v55, %v3178_v60  ;;  %v4604_v43 = vld [vmem:[#allocation20 + $0x190] sm:$0xff]   ;;  %v4606_v57 = vld [vmem:[#allocation20 + $0x1c8] sm:$0xff]   ;;  %v3175_v53 = vmul.f32 %v3150_v40, %v5220_v39  ;;  %v3207_v45 = vrot.slane %v5242_v36, %v5211_v18  ;;  %v4611_v39 = vld [vmem:[#allocation20 + $0x100] sm:$0xff]  }
 0x477   :  { %v3229_v7 = vmax.f32 %v3221_v62, 0.0  ;;  %v3231_v28 = vmax.f32 %v3223_v63, 0.0  ;;  %v3228_v1 = vmax.f32 %v3220_v59, 0.0  ;;  %v3230_v4 = vmax.f32 %v3222_v27, 0.0  ;;  %v4271_v27 = vld [vmem:[%s5308_s14] ss:$0 sm:$0xff] }
 0x478   :  { %v3233_v3 = vmax.f32 %v3225_v0, 0.0  ;;  %v3235_v24 = vmax.f32 %v3227_v23, 0.0  ;;  %v3224_v47 = vadd.f32 %v3199_v56, %v3175_v53  ;;  %v3226_v55 = vadd.f32 %v3207_v45, %v5278_v61  ;;  %s4883_s14 = scalar_lea.vmem %s3932_s0, 128 }
 0x479   :  { %v3237_v17 = vpack.c.bf16 %v3229_v7, %v3229_v7  ;;  %v3239_v2 = vpack.c.bf16 %v3231_v28, %v3231_v28  ;;  %v3236_v5 = vpack.c.bf16 %v3228_v1, %v3228_v1  ;;  %v3238_v37 = vpack.c.bf16 %v3230_v4, %v3230_v4  ;;  %p4884_p4 = scmp.ne.s32.totalorder %s3932_s0, %s4883_s14  ;;  %p4889_p6 = scmp.lt.s32.totalorder %s4883_s14, %s4883_s14 }
 0x47a   :  { %v3241_v29 = vpack.c.bf16 %v3233_v3, %v3233_v3  ;;  %v3243_v26 = vpack.c.bf16 %v3235_v24, %v3235_v24  ;;  %v3232_v54 = vmax.f32 %v3224_v47, 0.0  ;;  %v3234_v34 = vmax.f32 %v3226_v55, 0.0 }
 0x47b   :  { %3795 = vmatprep.mubr.bf16.mxu1 %v3237_v17  ;;  %3835 = vmatprep.mubr.bf16.mxu0 %v3239_v2  ;;  %p4890_p7 = por %p4889_p6, %p4888_p5 }
 0x47c   :  { %3796 = vmatmul.mubr.bf16.vlgmr.msra.gmra.mxu1 %v3236_v5  ;;  %3836 = vmatmul.mubr.bf16.vlgmr.msra.gmra.mxu0 %v3238_v37  ;;  %v3240_v18 = vpack.c.bf16 %v3232_v54, %v3232_v54  ;;  %v3242_v36 = vpack.c.bf16 %v3234_v34, %v3234_v34 }
 0x47d   :  { %4381 = vmatpush3.bf16.msra.mxu1 %v4583_v51  ;;  %4403 = vmatpush3.bf16.msra.mxu0 %v4584_v6  ;;  %p4891_p8 = pnand %p4890_p7, %p4884_p4 }
 0x47e   :  { %3875 = vmatprep.mubr.bf16.mxu1 %v3241_v29  ;;  %3915 = vmatprep.mubr.bf16.mxu0 %v3243_v26 }
 0x47f   :  { %4382 = vmatprep.subr.bf16.mxu1 %v4585_v44  ;;  %4404 = vmatprep.subr.bf16.mxu0 %v4586_v25 }
 0x481   :  { %4383 = vmatpush3.bf16.msra.mxu1 %v4587_v30  ;;  %4405 = vmatpush3.bf16.msra.mxu0 %v4588_v46 }
 0x482   :  { %4384 = vmatprep.subr.bf16.mxu1 %v4589_v9  ;;  %4406 = vmatprep.subr.bf16.mxu0 %v4590_v11 }
 0x485   :  { %4385 = vmatpush3.bf16.msra.mxu1 %v4591_v12  ;;  %4407 = vmatpush3.bf16.msra.mxu0 %v4592_v13 }
 0x486   :  { %4386 = vmatprep.subr.bf16.mxu1 %v4593_v14  ;;  %4408 = vmatprep.subr.bf16.mxu0 %v4594_v15 }
 0x489   :  { %4387 = vmatpush3.bf16.msra.mxu1 %v4595_v16  ;;  %4409 = vmatpush3.bf16.msra.mxu0 %v4596_v19 }
 0x48a   :  { %4388 = vmatprep.subr.bf16.mxu1 %v4597_v20  ;;  %4410 = vmatprep.subr.bf16.mxu0 %v4598_v21 }
 0x48d   :  { %4389 = vmatpush3.bf16.msra.mxu1 %v4599_v22  ;;  %4411 = vmatpush3.bf16.msra.mxu0 %v4600_v31 }
 0x48e   :  { %4390 = vmatprep.subr.bf16.mxu1 %v4601_v33  ;;  %4412 = vmatprep.subr.bf16.mxu0 %v4602_v35 }
 0x491   :  { %4391 = vmatpush3.bf16.msra.mxu1 %v4603_v42  ;;  %4413 = vmatpush3.bf16.msra.mxu0 %v4604_v43 }
 0x492   :  { %4392 = vmatprep.subr.bf16.mxu1 %v4605_v48  ;;  %4414 = vmatprep.subr.bf16.mxu0 %v4606_v57 }
 0x495   :  { %4393 = vmatpush3.bf16.msra.mxu1 %v4607_v49  ;;  %4415 = vmatpush3.bf16.msra.mxu0 %v4608_v41 }
 0x496   :  { %4394 = vmatprep.subr.bf16.mxu1 %v4609_v50  ;;  %4416 = vmatprep.subr.bf16.mxu0 %v4610_v52 }
 0x499   :  { %4395 = vmatpush3.bf16.msra.mxu1 %v4611_v39  ;;  %4417 = vmatpush3.bf16.msra.mxu0 %v4612_v10 }
 0x49c   :  { %3876 = vmatmul.mubr.bf16.vlgmr.msra.gmra.mxu1 %v3240_v18  ;;  %3916 = vmatmul.mubr.bf16.vlgmr.msra.gmra.mxu0 %v3242_v36 }
 0x53c   :  { %v4352_v58 = vpop.f32.mrf.mxu1  ;;  %v4374_v8 = vpop.f32.mrf.mxu0 }
 0x53e   :  { %v4353_v32 = vpop.f32.mrf.mxu1  ;;  %v4375_v38 = vpop.f32.mrf.mxu0 }
 0x53f   :  { %v4354_v59 = vadd.f32 %v4353_v32, %v4352_v58  ;;  %v4376_v28 = vadd.f32 %v4375_v38, %v4374_v8 }
 0x540   :  { %v4355_v60 = vpop.f32.mrf.mxu1  ;;  %v4377_v61 = vpop.f32.mrf.mxu0 }
 0x541   :  { %v3798_v0 = vadd.f32 %v4354_v59, %v4271_v27 }
 0x542   :  { %v4356_v62 = vpop.f32.mrf.mxu1  ;;  %v4378_v63 = vpop.f32.mrf.mxu0 }
 0x543   :  { %v3838_v3 = vadd.f32 %v4376_v28, %v3798_v0 }
 0x55c   :  { %v4396_v23 = vpop.f32.mrf.mxu1  ;;  %v4418_v7 = vpop.f32.mrf.mxu0 }
 0x55e   :  { %v4397_v1 = vpop.f32.mrf.mxu1  ;;  %v4419_v4 = vpop.f32.mrf.mxu0 }
 0x55f   :  { %v4398_v24 = vadd.f32 %v4397_v1, %v4396_v23  ;;  %v4420_v37 = vadd.f32 %v4419_v4, %v4418_v7 }
 0x560   :  { %v4399_v17 = vpop.f32.mrf.mxu1  ;;  %v4421_v2 = vpop.f32.mrf.mxu0 }
 0x561   :  { %v3878_v5 = vadd.f32 %v4398_v24, %v3838_v3 }
 0x562   :  { %v4400_v51 = vpop.f32.mrf.mxu1  ;;  %v4422_v6 = vpop.f32.mrf.mxu0 }
 0x563   :  { %v3918_v44 = vadd.f32 %v4420_v37, %v3878_v5 }
 0x565   :  { %4641 = vtanh.f32 %v3918_v44 }
 0x572   :  { %v4642_v25 = vpop.eup %4641 }
 0x573   :  { %3924 = vst [vmem:[#allocation22] sm:$0xff] %v4642_v25 }
 0x574   :  { %4894 = shalt.err (!%p4891_p8)
}
 0x575   :  { %3934 = dma.vmem_to_hbm [thread:$0]  %s3932_s0, 128, %s5309_s15, [#allocation4]  }
 0x576   :  { %4917 = dma.done.wait [#allocation4], 128  }
 0x577   :  { %4918 = vsyncadd [#allocation4], 4294967168 }
 0x578   :  { %3938 = vsyncpa [#allocation3], 1 }
 0x579   :  { %3939 = vsyncpa [#allocation6], 1 }
 0x57a   :  { %3940 = vsyncpa [#allocation9], 1 }
 0x57b   :  { %3941 = vsyncpa [#allocation12], 1 }
 0x57c   :  { %3942 = vsyncpa [#allocation15], 1 }
 0x57d   :  { %3943 = vsyncpa [#allocation18], 1 }
 0x57e   :  { %3944 = vsyncpa [#allocation21], 1 }
 0x57f   :  { %3945 = vsyncpa [#allocation4], 1 }

</bundles_post_ra>
